<compile_context>
chip_gen: v7x
topology: tpu7x:2x2x1
jax: 0.10.0
libtpu: 0.0.40
codegen_flags: <defaults>
</compile_context>

<pallas_src>
import functools

import jax
import jax.numpy as jnp
from jax import lax
from jax.experimental import pallas as pl
from jax.experimental.pallas import tpu as pltpu

EPS = 1e-5  # PyTorch BatchNorm2d default eps


def _conv_tile(mask_ref, xp_ref, xc_ref, xn_ref, w_ref, *, W, tm):
    """3x3 conv over one lane-dense row tile, patches built in-kernel.

    xp/xc/xn: (Cin_p, tm) bf16 -- previous / current / next row blocks of the
              per-image flat, zero-padded input (halo of every tap shift lives
              in the neighbouring block or in the zero padding).
    mask_ref: (3, tm) bf16 -- column-boundary / valid-row multipliers indexed
              by the tap's dx (0: needs x-1, 1: centre, 2: needs x+1).
    w_ref:    (9, Cout, Cin_p) bf16 -- per-tap weights, tap index t = dy*3+dx.
    Returns (Cout, tm) f32 conv output for this tile.
    """
    big = jnp.concatenate([xp_ref[...], xc_ref[...], xn_ref[...]], axis=1)  # (Cin_p, 3*tm)
    mcol = [mask_ref[i:i + 1, :] for i in range(3)]                         # 3 x (1, tm)
    cout = w_ref.shape[1]
    acc = jnp.zeros((cout, tm), jnp.float32)
    for dy in range(3):
        for dx in range(3):
            t = dy * 3 + dx
            d = (dy - 1) * W + (dx - 1)              # flat shift of this tap
            shifted = big[:, tm + d: 2 * tm + d]     # (Cin_p, tm) bf16
            tap = shifted * mcol[dx]                 # boundary mask
            acc = acc + jnp.dot(w_ref[t], tap, preferred_element_type=jnp.float32)
    return acc


def _stats_kernel(mask_ref, xp_ref, xc_ref, xn_ref, w_ref, sum_ref, sq_ref, *, W, tm):
    """Pass 1: per-channel sum / sum-of-squares of the conv output (one sweep)."""
    @pl.when(pl.program_id(1) == 0)
    def _init():
        sum_ref[...] = jnp.zeros_like(sum_ref)
        sq_ref[...] = jnp.zeros_like(sq_ref)

    acc = _conv_tile(mask_ref, xp_ref, xc_ref, xn_ref, w_ref, W=W, tm=tm)
    sum_ref[...] += jnp.sum(acc, axis=1, keepdims=True)
    sq_ref[...] += jnp.sum(acc * acc, axis=1, keepdims=True)


def _conv_bn_relu_kernel(mask_ref, xp_ref, xc_ref, xn_ref, w_ref,
                         scale_ref, shift_ref, out_ref, *, W, tm):
    """Pass 2: conv with BN folded into per-channel scale/shift, then ReLU."""
    acc = _conv_tile(mask_ref, xp_ref, xc_ref, xn_ref, w_ref, W=W, tm=tm)
    y = acc * scale_ref[...] + shift_ref[...]        # (Cout,1) broadcast over lanes
    out_ref[...] = jnp.maximum(y, 0.0).astype(out_ref.dtype)


def _pick_row_tile(L, W, cap):
    """Largest multiple-of-128 divisor of L that is <= cap and >= W+1 (so the
    3x3 tap halo fits inside one neighbouring block); falls back upward."""
    divs = [t for t in range(128, L + 1, 128) if L % t == 0]
    ok = [t for t in divs if t >= W + 1]
    if not ok:
        return L
    below = [t for t in ok if t <= max(cap, 128)]
    return max(below) if below else min(ok)


def resnet_start_single(x_nchw, w_oihw, bias, gamma, beta, *,
                        row_tile_cap=1024, out_dtype=jnp.float32):
    """Forward pass of ResNet_Start_single. Input/output are NCHW like PyTorch.

    Set out_dtype=jnp.bfloat16 to halve output HBM traffic if the downstream
    layer accepts bf16.
    """
    del bias  # exactly cancelled by train-mode BatchNorm (mean/var shift-invariance)
    # TODO(synk): BatchNorm running-mean/var (momentum) buffer updates are a
    # training side effect only and are not produced here.

    N, Cin, H, W = x_nchw.shape
    Cout = w_oihw.shape[0]
    HW = H * W
    L = ((HW + 127) // 128) * 128        # per-image row count, lane-aligned
    Cin_p = ((Cin + 7) // 8) * 8         # sublane-aligned channel count
    tm = _pick_row_tile(L, W, row_tile_cap)
    assert tm >= W + 1, "row tile must cover the 3x3 halo (need tm >= W+1)"
    bpi = L // tm                        # row blocks per image

    # Lane-dense per-image flat layout: x_flat[n, ci, tm + y*W + x]; the tm of
    # zeros on each side provides both the pipeline halo and the conv's spatial
    # zero padding in y (x-boundaries are handled by the mask below).
    x_flat = jnp.pad(x_nchw.astype(jnp.bfloat16).reshape(N, Cin, HW),
                     ((0, 0), (0, Cin_p - Cin), (tm, tm + L - HW)))

    # Per-tap weights (t = dy*3 + dx), channels padded to Cin_p.
    w9 = jnp.pad(
        w_oihw.astype(jnp.bfloat16).transpose(2, 3, 0, 1).reshape(9, Cout, Cin),
        ((0, 0), (0, 0), (0, Cin_p - Cin)))

    # Column-boundary / valid-row multipliers, indexed by the tap's dx.
    q = jnp.arange(L, dtype=jnp.int32)
    col = q % W
    valid = q < HW
    mask = jnp.stack([valid & (col >= 1), valid, valid & (col <= W - 2)]
                     ).astype(jnp.bfloat16)                           # (3, L)

    vmem_limit = 32 * 1024 * 1024   # explicit; well under v7x's 64 MiB physical VMEM
    conv_flops = 2 * N * HW * 9 * Cin_p * Cout
    in_bytes = 3 * x_flat.size * 2 + w9.size * 2 + mask.size * 2

    mask_spec = pl.BlockSpec((3, tm), lambda n, b: (0, b))
    x_prev_spec = pl.BlockSpec((None, Cin_p, tm), lambda n, b: (n, 0, b))
    x_cur_spec = pl.BlockSpec((None, Cin_p, tm), lambda n, b: (n, 0, b + 1))
    x_next_spec = pl.BlockSpec((None, Cin_p, tm), lambda n, b: (n, 0, b + 2))
    w_spec = pl.BlockSpec((9, Cout, Cin_p), lambda n, b: (0, 0, 0))

    # ---------------- pass 1: BN batch statistics (single sweep) -----------------
    csum, csq = pl.pallas_call(
        functools.partial(_stats_kernel, W=W, tm=tm),
        out_shape=(jax.ShapeDtypeStruct((N, Cout, 1), jnp.float32),
                   jax.ShapeDtypeStruct((N, Cout, 1), jnp.float32)),
        grid=(N, bpi),
        in_specs=[mask_spec, x_prev_spec, x_cur_spec, x_next_spec, w_spec],
        out_specs=(pl.BlockSpec((None, Cout, 1), lambda n, b: (n, 0, 0)),
                   pl.BlockSpec((None, Cout, 1), lambda n, b: (n, 0, 0))),
        compiler_params=pltpu.CompilerParams(
            dimension_semantics=("parallel", "arbitrary"),
            vmem_limit_bytes=vmem_limit),
        cost_estimate=pl.CostEstimate(
            flops=conv_flops, transcendentals=0,
            bytes_accessed=in_bytes + 2 * N * Cout * 4),
    )(mask, x_flat, x_flat, x_flat, w9)

    # --- fold BN into per-channel scale/shift (tiny (Cout,)-sized math).
    count = jnp.float32(N * HW)
    mean = csum.sum(axis=0)[:, 0] / count                       # (Cout,)
    var = jnp.maximum(csq.sum(axis=0)[:, 0] / count - mean * mean, 0.0)  # biased, clamped
    inv = lax.rsqrt(var + EPS)
    scale_c = gamma.astype(jnp.float32) * inv
    shift_c = beta.astype(jnp.float32) - mean * scale_c
    scale = scale_c.reshape(Cout, 1)
    shift = shift_c.reshape(Cout, 1)

    # -------- pass 2: conv * scale + shift, ReLU, direct NCHW block layout --------
    out_bytes = N * Cout * L * jnp.dtype(out_dtype).itemsize
    out3 = pl.pallas_call(
        functools.partial(_conv_bn_relu_kernel, W=W, tm=tm),
        out_shape=jax.ShapeDtypeStruct((N, Cout, L), out_dtype),
        grid=(N, bpi),
        in_specs=[mask_spec, x_prev_spec, x_cur_spec, x_next_spec, w_spec,
                  pl.BlockSpec((Cout, 1), lambda n, b: (0, 0)),
                  pl.BlockSpec((Cout, 1), lambda n, b: (0, 0))],
        out_specs=pl.BlockSpec((None, Cout, tm), lambda n, b: (n, 0, b)),
        compiler_params=pltpu.CompilerParams(
            dimension_semantics=("parallel", "parallel"),
            vmem_limit_bytes=vmem_limit),
        cost_estimate=pl.CostEstimate(
            flops=conv_flops, transcendentals=0,
            bytes_accessed=in_bytes + 2 * Cout * 4 + out_bytes),
    )(mask, x_flat, x_flat, x_flat, w9, scale, shift)

    # (N, Cout, H*W) -> (N, Cout, H, W): free when H*W is lane-aligned.
    if L != HW:
        out3 = out3[:, :, :HW]
    return out3.reshape(N, Cout, H, W)


def _reference(x_nchw, w_oihw, bias, gamma, beta):
    """Pure-JAX reference matching PyTorch semantics (conv+bias, train-mode BN, relu)."""
    y = lax.conv_general_dilated(
        x_nchw.astype(jnp.float32), w_oihw.astype(jnp.float32),
        window_strides=(1, 1), padding=((1, 1), (1, 1)),
        dimension_numbers=("NCHW", "OIHW", "NCHW"),
    ) + bias.reshape(1, -1, 1, 1)
    mean = y.mean(axis=(0, 2, 3), keepdims=True)
    var = ((y - mean) ** 2).mean(axis=(0, 2, 3), keepdims=True)
    y = (y - mean) * lax.rsqrt(var + EPS) * gamma.reshape(1, -1, 1, 1) + beta.reshape(1, -1, 1, 1)
    return jnp.maximum(y, 0.0)


if __name__ == "__main__":
    # Small shapes consistent with the module: input_size (Cin) = 4, Cout = 64.
    N, Cin, H, W = 2, 4, 16, 16
    Cout = 64

    key = jax.random.PRNGKey(0)
    kx, kw, kb = jax.random.split(key, 3)
    x = jax.random.normal(kx, (N, Cin, H, W), jnp.float32)

    conv_w = 0.1 * jax.random.normal(kw, (Cout, Cin, 3, 3), jnp.float32)
    conv_b = 0.1 * jax.random.normal(kb, (Cout,), jnp.float32)
    bn_gamma = jnp.ones((Cout,), jnp.float32)   # BatchNorm2d default weight init
    bn_beta = jnp.zeros((Cout,), jnp.float32)   # BatchNorm2d default bias init

    out = jax.jit(resnet_start_single)(x, conv_w, conv_b, bn_gamma, bn_beta)
    out = jax.block_until_ready(out)

    ref = _reference(x, conv_w, conv_b, bn_gamma, bn_beta)
    assert out.shape == (N, Cout, H, W), out.shape
    # Tolerance slightly loosened vs. pure-f32 because the matmul inputs are bf16;
    # BN statistics and all elementwise math remain f32.
    assert jnp.allclose(out, ref, rtol=2e-2, atol=2e-2), float(jnp.max(jnp.abs(out - ref)))

    print("KERNEL_OK")
</pallas_src>

<mosaic_0001>
module attributes {stable_mosaic.version = 11 : i64} {
  func.func @_stats_kernel(%arg0: i32, %arg1: i32, %arg2: memref<3x256xbf16, #tpu.memory_space<vmem>>, %arg3: memref<1x8x256xbf16, #tpu.memory_space<vmem>>, %arg4: memref<1x8x256xbf16, #tpu.memory_space<vmem>>, %arg5: memref<1x8x256xbf16, #tpu.memory_space<vmem>>, %arg6: memref<9x64x8xbf16, #tpu.memory_space<vmem>>, %arg7: memref<1x64x1xf32, #tpu.memory_space<vmem>>, %arg8: memref<1x64x1xf32, #tpu.memory_space<vmem>>) attributes {dimension_semantics = [#tpu.dimension_semantics<parallel>, #tpu.dimension_semantics<arbitrary>], iteration_bounds = array<i64: 2, 1>, scalar_prefetch = 0 : i64, scratch_operands = 0 : i64, tpu.core_type = #tpu.core_type<tc>, window_params = [{transform_indices = @transform_0, window_bounds = array<i64: 3, 256>}, {transform_indices = @transform_1, window_bounds = array<i64: 1, 8, 256>}, {transform_indices = @transform_2, window_bounds = array<i64: 1, 8, 256>}, {transform_indices = @transform_3, window_bounds = array<i64: 1, 8, 256>}, {pipeline_mode = #tpu.pipeline_mode<synchronous>, transform_indices = @transform_4, window_bounds = array<i64: 9, 64, 8>}, {transform_indices = @transform_5, window_bounds = array<i64: 1, 64, 1>}, {transform_indices = @transform_6, window_bounds = array<i64: 1, 64, 1>}]} {
    %c0_i32 = arith.constant 0 : i32
    %0 = arith.cmpi eq, %arg1, %c0_i32 : i32
    %1 = arith.extui %0 : i1 to i32
    %c0_i32_0 = arith.constant 0 : i32
    %2 = arith.cmpi ne, %1, %c0_i32_0 : i32
    scf.if %2 {
      %cst_57 = arith.constant 0.000000e+00 : f32
      %94 = vector.broadcast %cst_57 : f32 to vector<64x1xf32>
      %c0_58 = arith.constant 0 : index
      %c0_59 = arith.constant 0 : index
      %c0_60 = arith.constant 0 : index
      %95 = vector.load %arg7[%c0_58, %c0_59, %c0_60] : memref<1x64x1xf32, #tpu.memory_space<vmem>>, vector<1x64x1xf32>
      %96 = vector.shape_cast %95 : vector<1x64x1xf32> to vector<64x1xf32>
      %97 = vector.shape_cast %94 : vector<64x1xf32> to vector<1x64x1xf32>
      tpu.vector_store %arg7[%c0_58, %c0_59, %c0_60], %97 {strides = array<i32>} : memref<1x64x1xf32, #tpu.memory_space<vmem>>, vector<1x64x1xf32>,
      %cst_61 = arith.constant 0.000000e+00 : f32
      %98 = vector.broadcast %cst_61 : f32 to vector<64x1xf32>
      %c0_62 = arith.constant 0 : index
      %c0_63 = arith.constant 0 : index
      %c0_64 = arith.constant 0 : index
      %99 = vector.load %arg8[%c0_62, %c0_63, %c0_64] : memref<1x64x1xf32, #tpu.memory_space<vmem>>, vector<1x64x1xf32>
      %100 = vector.shape_cast %99 : vector<1x64x1xf32> to vector<64x1xf32>
      %101 = vector.shape_cast %98 : vector<64x1xf32> to vector<1x64x1xf32>
      tpu.vector_store %arg8[%c0_62, %c0_63, %c0_64], %101 {strides = array<i32>} : memref<1x64x1xf32, #tpu.memory_space<vmem>>, vector<1x64x1xf32>,
    } else {
    }
    %c0 = arith.constant 0 : index
    %c0_1 = arith.constant 0 : index
    %c0_2 = arith.constant 0 : index
    %3 = vector.load %arg3[%c0, %c0_1, %c0_2] : memref<1x8x256xbf16, #tpu.memory_space<vmem>>, vector<1x8x256xbf16>
    %4 = vector.shape_cast %3 : vector<1x8x256xbf16> to vector<8x256xbf16>
    %c0_3 = arith.constant 0 : index
    %c0_4 = arith.constant 0 : index
    %c0_5 = arith.constant 0 : index
    %5 = vector.load %arg4[%c0_3, %c0_4, %c0_5] : memref<1x8x256xbf16, #tpu.memory_space<vmem>>, vector<1x8x256xbf16>
    %6 = vector.shape_cast %5 : vector<1x8x256xbf16> to vector<8x256xbf16>
    %c0_6 = arith.constant 0 : index
    %c0_7 = arith.constant 0 : index
    %c0_8 = arith.constant 0 : index
    %7 = vector.load %arg5[%c0_6, %c0_7, %c0_8] : memref<1x8x256xbf16, #tpu.memory_space<vmem>>, vector<1x8x256xbf16>
    %8 = vector.shape_cast %7 : vector<1x8x256xbf16> to vector<8x256xbf16>
    %9 = tpu.concatenate %4, %6, %8 in 1 : vector<8x256xbf16>, vector<8x256xbf16>, vector<8x256xbf16> -> vector<8x768xbf16>
    %c0_9 = arith.constant 0 : index
    %c0_10 = arith.constant 0 : index
    %10 = vector.load %arg2[%c0_9, %c0_10] : memref<3x256xbf16, #tpu.memory_space<vmem>>, vector<1x256xbf16>
    %c1 = arith.constant 1 : index
    %c0_11 = arith.constant 0 : index
    %11 = vector.load %arg2[%c1, %c0_11] : memref<3x256xbf16, #tpu.memory_space<vmem>>, vector<1x256xbf16>
    %c2 = arith.constant 2 : index
    %c0_12 = arith.constant 0 : index
    %12 = vector.load %arg2[%c2, %c0_12] : memref<3x256xbf16, #tpu.memory_space<vmem>>, vector<1x256xbf16>
    %cst = arith.constant 0.000000e+00 : f32
    %13 = vector.broadcast %cst : f32 to vector<64x256xf32>
    %14 = vector.extract_strided_slice %9 {offsets = [0, 239], sizes = [8, 256], strides = [1, 1]} : vector<8x768xbf16> to vector<8x256xbf16>
    %15 = vector.broadcast %10 : vector<1x256xbf16> to vector<8x256xbf16>
    %16 = arith.mulf %14, %15 : vector<8x256xbf16>
    %c0_13 = arith.constant 0 : index
    %c0_14 = arith.constant 0 : index
    %c0_15 = arith.constant 0 : index
    %17 = vector.load %arg6[%c0_13, %c0_14, %c0_15] : memref<9x64x8xbf16, #tpu.memory_space<vmem>>, vector<1x64x8xbf16>
    %18 = vector.shape_cast %17 : vector<1x64x8xbf16> to vector<64x8xbf16>
    %cst_16 = arith.constant dense<0.000000e+00> : vector<64x256xf32>
    %19 = tpu.matmul %18, %16, %cst_16 {dimension_numbers = #tpu.dot_dimension_numbers<[1], [0], [0], [1], [0, 0, 1, 1], [], []>} : vector<64x8xbf16>, vector<8x256xbf16>, vector<64x256xf32> -> vector<64x256xf32>
    %20 = arith.addf %13, %19 : vector<64x256xf32>
    %21 = vector.extract_strided_slice %9 {offsets = [0, 240], sizes = [8, 256], strides = [1, 1]} : vector<8x768xbf16> to vector<8x256xbf16>
    %22 = vector.broadcast %11 : vector<1x256xbf16> to vector<8x256xbf16>
    %23 = arith.mulf %21, %22 : vector<8x256xbf16>
    %c1_17 = arith.constant 1 : index
    %c0_18 = arith.constant 0 : index
    %c0_19 = arith.constant 0 : index
    %24 = vector.load %arg6[%c1_17, %c0_18, %c0_19] : memref<9x64x8xbf16, #tpu.memory_space<vmem>>, vector<1x64x8xbf16>
    %25 = vector.shape_cast %24 : vector<1x64x8xbf16> to vector<64x8xbf16>
    %cst_20 = arith.constant dense<0.000000e+00> : vector<64x256xf32>
    %26 = tpu.matmul %25, %23, %cst_20 {dimension_numbers = #tpu.dot_dimension_numbers<[1], [0], [0], [1], [0, 0, 1, 1], [], []>} : vector<64x8xbf16>, vector<8x256xbf16>, vector<64x256xf32> -> vector<64x256xf32>
    %27 = arith.addf %20, %26 : vector<64x256xf32>
    %28 = vector.extract_strided_slice %9 {offsets = [0, 241], sizes = [8, 256], strides = [1, 1]} : vector<8x768xbf16> to vector<8x256xbf16>
    %29 = vector.broadcast %12 : vector<1x256xbf16> to vector<8x256xbf16>
    %30 = arith.mulf %28, %29 : vector<8x256xbf16>
    %c2_21 = arith.constant 2 : index
    %c0_22 = arith.constant 0 : index
    %c0_23 = arith.constant 0 : index
    %31 = vector.load %arg6[%c2_21, %c0_22, %c0_23] : memref<9x64x8xbf16, #tpu.memory_space<vmem>>, vector<1x64x8xbf16>
    %32 = vector.shape_cast %31 : vector<1x64x8xbf16> to vector<64x8xbf16>
    %cst_24 = arith.constant dense<0.000000e+00> : vector<64x256xf32>
    %33 = tpu.matmul %32, %30, %cst_24 {dimension_numbers = #tpu.dot_dimension_numbers<[1], [0], [0], [1], [0, 0, 1, 1], [], []>} : vector<64x8xbf16>, vector<8x256xbf16>, vector<64x256xf32> -> vector<64x256xf32>
    %34 = arith.addf %27, %33 : vector<64x256xf32>
    %35 = vector.extract_strided_slice %9 {offsets = [0, 255], sizes = [8, 256], strides = [1, 1]} : vector<8x768xbf16> to vector<8x256xbf16>
    %36 = vector.broadcast %10 : vector<1x256xbf16> to vector<8x256xbf16>
    %37 = arith.mulf %35, %36 : vector<8x256xbf16>
    %c3 = arith.constant 3 : index
    %c0_25 = arith.constant 0 : index
    %c0_26 = arith.constant 0 : index
    %38 = vector.load %arg6[%c3, %c0_25, %c0_26] : memref<9x64x8xbf16, #tpu.memory_space<vmem>>, vector<1x64x8xbf16>
    %39 = vector.shape_cast %38 : vector<1x64x8xbf16> to vector<64x8xbf16>
    %cst_27 = arith.constant dense<0.000000e+00> : vector<64x256xf32>
    %40 = tpu.matmul %39, %37, %cst_27 {dimension_numbers = #tpu.dot_dimension_numbers<[1], [0], [0], [1], [0, 0, 1, 1], [], []>} : vector<64x8xbf16>, vector<8x256xbf16>, vector<64x256xf32> -> vector<64x256xf32>
    %41 = arith.addf %34, %40 : vector<64x256xf32>
    %42 = vector.extract_strided_slice %9 {offsets = [0, 256], sizes = [8, 256], strides = [1, 1]} : vector<8x768xbf16> to vector<8x256xbf16>
    %43 = vector.broadcast %11 : vector<1x256xbf16> to vector<8x256xbf16>
    %44 = arith.mulf %42, %43 : vector<8x256xbf16>
    %c4 = arith.constant 4 : index
    %c0_28 = arith.constant 0 : index
    %c0_29 = arith.constant 0 : index
    %45 = vector.load %arg6[%c4, %c0_28, %c0_29] : memref<9x64x8xbf16, #tpu.memory_space<vmem>>, vector<1x64x8xbf16>
    %46 = vector.shape_cast %45 : vector<1x64x8xbf16> to vector<64x8xbf16>
    %cst_30 = arith.constant dense<0.000000e+00> : vector<64x256xf32>
    %47 = tpu.matmul %46, %44, %cst_30 {dimension_numbers = #tpu.dot_dimension_numbers<[1], [0], [0], [1], [0, 0, 1, 1], [], []>} : vector<64x8xbf16>, vector<8x256xbf16>, vector<64x256xf32> -> vector<64x256xf32>
    %48 = arith.addf %41, %47 : vector<64x256xf32>
    %49 = vector.extract_strided_slice %9 {offsets = [0, 257], sizes = [8, 256], strides = [1, 1]} : vector<8x768xbf16> to vector<8x256xbf16>
    %50 = vector.broadcast %12 : vector<1x256xbf16> to vector<8x256xbf16>
    %51 = arith.mulf %49, %50 : vector<8x256xbf16>
    %c5 = arith.constant 5 : index
    %c0_31 = arith.constant 0 : index
    %c0_32 = arith.constant 0 : index
    %52 = vector.load %arg6[%c5, %c0_31, %c0_32] : memref<9x64x8xbf16, #tpu.memory_space<vmem>>, vector<1x64x8xbf16>
    %53 = vector.shape_cast %52 : vector<1x64x8xbf16> to vector<64x8xbf16>
    %cst_33 = arith.constant dense<0.000000e+00> : vector<64x256xf32>
    %54 = tpu.matmul %53, %51, %cst_33 {dimension_numbers = #tpu.dot_dimension_numbers<[1], [0], [0], [1], [0, 0, 1, 1], [], []>} : vector<64x8xbf16>, vector<8x256xbf16>, vector<64x256xf32> -> vector<64x256xf32>
    %55 = arith.addf %48, %54 : vector<64x256xf32>
    %56 = vector.extract_strided_slice %9 {offsets = [0, 271], sizes = [8, 256], strides = [1, 1]} : vector<8x768xbf16> to vector<8x256xbf16>
    %57 = vector.broadcast %10 : vector<1x256xbf16> to vector<8x256xbf16>
    %58 = arith.mulf %56, %57 : vector<8x256xbf16>
    %c6 = arith.constant 6 : index
    %c0_34 = arith.constant 0 : index
    %c0_35 = arith.constant 0 : index
    %59 = vector.load %arg6[%c6, %c0_34, %c0_35] : memref<9x64x8xbf16, #tpu.memory_space<vmem>>, vector<1x64x8xbf16>
    %60 = vector.shape_cast %59 : vector<1x64x8xbf16> to vector<64x8xbf16>
    %cst_36 = arith.constant dense<0.000000e+00> : vector<64x256xf32>
    %61 = tpu.matmul %60, %58, %cst_36 {dimension_numbers = #tpu.dot_dimension_numbers<[1], [0], [0], [1], [0, 0, 1, 1], [], []>} : vector<64x8xbf16>, vector<8x256xbf16>, vector<64x256xf32> -> vector<64x256xf32>
    %62 = arith.addf %55, %61 : vector<64x256xf32>
    %63 = vector.extract_strided_slice %9 {offsets = [0, 272], sizes = [8, 256], strides = [1, 1]} : vector<8x768xbf16> to vector<8x256xbf16>
    %64 = vector.broadcast %11 : vector<1x256xbf16> to vector<8x256xbf16>
    %65 = arith.mulf %63, %64 : vector<8x256xbf16>
    %c7 = arith.constant 7 : index
    %c0_37 = arith.constant 0 : index
    %c0_38 = arith.constant 0 : index
    %66 = vector.load %arg6[%c7, %c0_37, %c0_38] : memref<9x64x8xbf16, #tpu.memory_space<vmem>>, vector<1x64x8xbf16>
    %67 = vector.shape_cast %66 : vector<1x64x8xbf16> to vector<64x8xbf16>
    %cst_39 = arith.constant dense<0.000000e+00> : vector<64x256xf32>
    %68 = tpu.matmul %67, %65, %cst_39 {dimension_numbers = #tpu.dot_dimension_numbers<[1], [0], [0], [1], [0, 0, 1, 1], [], []>} : vector<64x8xbf16>, vector<8x256xbf16>, vector<64x256xf32> -> vector<64x256xf32>
    %69 = arith.addf %62, %68 : vector<64x256xf32>
    %70 = vector.extract_strided_slice %9 {offsets = [0, 273], sizes = [8, 256], strides = [1, 1]} : vector<8x768xbf16> to vector<8x256xbf16>
    %71 = vector.broadcast %12 : vector<1x256xbf16> to vector<8x256xbf16>
    %72 = arith.mulf %70, %71 : vector<8x256xbf16>
    %c8 = arith.constant 8 : index
    %c0_40 = arith.constant 0 : index
    %c0_41 = arith.constant 0 : index
    %73 = vector.load %arg6[%c8, %c0_40, %c0_41] : memref<9x64x8xbf16, #tpu.memory_space<vmem>>, vector<1x64x8xbf16>
    %74 = vector.shape_cast %73 : vector<1x64x8xbf16> to vector<64x8xbf16>
    %cst_42 = arith.constant dense<0.000000e+00> : vector<64x256xf32>
    %75 = tpu.matmul %74, %72, %cst_42 {dimension_numbers = #tpu.dot_dimension_numbers<[1], [0], [0], [1], [0, 0, 1, 1], [], []>} : vector<64x8xbf16>, vector<8x256xbf16>, vector<64x256xf32> -> vector<64x256xf32>
    %76 = arith.addf %69, %75 : vector<64x256xf32>
    %c0_43 = arith.constant 0 : index
    %c0_44 = arith.constant 0 : index
    %c0_45 = arith.constant 0 : index
    %77 = vector.load %arg7[%c0_43, %c0_44, %c0_45] : memref<1x64x1xf32, #tpu.memory_space<vmem>>, vector<1x64x1xf32>
    %78 = vector.shape_cast %77 : vector<1x64x1xf32> to vector<64x1xf32>
    %cst_46 = arith.constant dense<0.000000e+00> : vector<64xf32>
    %79 = vector.multi_reduction <add>, %76, %cst_46 [1] : vector<64x256xf32> to vector<64xf32>
    %80 = vector.shape_cast %79 : vector<64xf32> to vector<64x1xf32>
    %81 = arith.addf %78, %80 : vector<64x1xf32>
    %c0_47 = arith.constant 0 : index
    %c0_48 = arith.constant 0 : index
    %c0_49 = arith.constant 0 : index
    %82 = vector.load %arg7[%c0_47, %c0_48, %c0_49] : memref<1x64x1xf32, #tpu.memory_space<vmem>>, vector<1x64x1xf32>
    %83 = vector.shape_cast %82 : vector<1x64x1xf32> to vector<64x1xf32>
    %84 = vector.shape_cast %81 : vector<64x1xf32> to vector<1x64x1xf32>
    tpu.vector_store %arg7[%c0_47, %c0_48, %c0_49], %84 {strides = array<i32>} : memref<1x64x1xf32, #tpu.memory_space<vmem>>, vector<1x64x1xf32>,
    %c0_50 = arith.constant 0 : index
    %c0_51 = arith.constant 0 : index
    %c0_52 = arith.constant 0 : index
    %85 = vector.load %arg8[%c0_50, %c0_51, %c0_52] : memref<1x64x1xf32, #tpu.memory_space<vmem>>, vector<1x64x1xf32>
    %86 = vector.shape_cast %85 : vector<1x64x1xf32> to vector<64x1xf32>
    %87 = arith.mulf %76, %76 : vector<64x256xf32>
    %cst_53 = arith.constant dense<0.000000e+00> : vector<64xf32>
    %88 = vector.multi_reduction <add>, %87, %cst_53 [1] : vector<64x256xf32> to vector<64xf32>
    %89 = vector.shape_cast %88 : vector<64xf32> to vector<64x1xf32>
    %90 = arith.addf %86, %89 : vector<64x1xf32>
    %c0_54 = arith.constant 0 : index
    %c0_55 = arith.constant 0 : index
    %c0_56 = arith.constant 0 : index
    %91 = vector.load %arg8[%c0_54, %c0_55, %c0_56] : memref<1x64x1xf32, #tpu.memory_space<vmem>>, vector<1x64x1xf32>
    %92 = vector.shape_cast %91 : vector<1x64x1xf32> to vector<64x1xf32>
    %93 = vector.shape_cast %90 : vector<64x1xf32> to vector<1x64x1xf32>
    tpu.vector_store %arg8[%c0_54, %c0_55, %c0_56], %93 {strides = array<i32>} : memref<1x64x1xf32, #tpu.memory_space<vmem>>, vector<1x64x1xf32>,
    return
  }
  func.func @transform_0(%arg0: i32, %arg1: i32) -> (i32, i32) {
    %c0_i32 = arith.constant 0 : i32
    %c0_i32_0 = arith.constant 0 : i32
    return %c0_i32, %arg1 : i32, i32
  }
  func.func @transform_1(%arg0: i32, %arg1: i32) -> (i32, i32, i32) {
    %c0_i32 = arith.constant 0 : i32
    %c0_i32_0 = arith.constant 0 : i32
    return %arg0, %c0_i32, %arg1 : i32, i32, i32
  }
  func.func @transform_2(%arg0: i32, %arg1: i32) -> (i32, i32, i32) {
    %c1_i32 = arith.constant 1 : i32
    %0 = arith.addi %arg1, %c1_i32 : i32
    %c0_i32 = arith.constant 0 : i32
    %c0_i32_0 = arith.constant 0 : i32
    return %arg0, %c0_i32, %0 : i32, i32, i32
  }
  func.func @transform_3(%arg0: i32, %arg1: i32) -> (i32, i32, i32) {
    %c2_i32 = arith.constant 2 : i32
    %0 = arith.addi %arg1, %c2_i32 : i32
    %c0_i32 = arith.constant 0 : i32
    %c0_i32_0 = arith.constant 0 : i32
    return %arg0, %c0_i32, %0 : i32, i32, i32
  }
  func.func @transform_4(%arg0: i32, %arg1: i32) -> (i32, i32, i32) {
    %c0_i32 = arith.constant 0 : i32
    %c0_i32_0 = arith.constant 0 : i32
    %c0_i32_1 = arith.constant 0 : i32
    %c0_i32_2 = arith.constant 0 : i32
    return %c0_i32, %c0_i32_0, %c0_i32_1 : i32, i32, i32
  }
  func.func @transform_5(%arg0: i32, %arg1: i32) -> (i32, i32, i32) {
    %c0_i32 = arith.constant 0 : i32
    %c0_i32_0 = arith.constant 0 : i32
    %c0_i32_1 = arith.constant 0 : i32
    return %arg0, %c0_i32, %c0_i32_0 : i32, i32, i32
  }
  func.func @transform_6(%arg0: i32, %arg1: i32) -> (i32, i32, i32) {
    %c0_i32 = arith.constant 0 : i32
    %c0_i32_0 = arith.constant 0 : i32
    %c0_i32_1 = arith.constant 0 : i32
    return %arg0, %c0_i32, %c0_i32_0 : i32, i32, i32
  }
}

module attributes {stable_mosaic.version = 11 : i64} {
  func.func @_conv_bn_relu_kernel(%arg0: i32, %arg1: i32, %arg2: memref<3x256xbf16, #tpu.memory_space<vmem>>, %arg3: memref<1x8x256xbf16, #tpu.memory_space<vmem>>, %arg4: memref<1x8x256xbf16, #tpu.memory_space<vmem>>, %arg5: memref<1x8x256xbf16, #tpu.memory_space<vmem>>, %arg6: memref<9x64x8xbf16, #tpu.memory_space<vmem>>, %arg7: memref<64x1xf32, #tpu.memory_space<vmem>>, %arg8: memref<64x1xf32, #tpu.memory_space<vmem>>, %arg9: memref<1x64x256xf32, #tpu.memory_space<vmem>>) attributes {dimension_semantics = [#tpu.dimension_semantics<parallel>, #tpu.dimension_semantics<parallel>], iteration_bounds = array<i64: 2, 1>, scalar_prefetch = 0 : i64, scratch_operands = 0 : i64, tpu.core_type = #tpu.core_type<tc>, window_params = [{transform_indices = @transform_0, window_bounds = array<i64: 3, 256>}, {transform_indices = @transform_1, window_bounds = array<i64: 1, 8, 256>}, {transform_indices = @transform_2, window_bounds = array<i64: 1, 8, 256>}, {transform_indices = @transform_3, window_bounds = array<i64: 1, 8, 256>}, {pipeline_mode = #tpu.pipeline_mode<synchronous>, transform_indices = @transform_4, window_bounds = array<i64: 9, 64, 8>}, {pipeline_mode = #tpu.pipeline_mode<synchronous>, transform_indices = @transform_5, window_bounds = array<i64: 64, 1>}, {pipeline_mode = #tpu.pipeline_mode<synchronous>, transform_indices = @transform_6, window_bounds = array<i64: 64, 1>}, {transform_indices = @transform_7, window_bounds = array<i64: 1, 64, 256>}]} {
    %c0 = arith.constant 0 : index
    %c0_0 = arith.constant 0 : index
    %c0_1 = arith.constant 0 : index
    %0 = vector.load %arg3[%c0, %c0_0, %c0_1] : memref<1x8x256xbf16, #tpu.memory_space<vmem>>, vector<1x8x256xbf16>
    %1 = vector.shape_cast %0 : vector<1x8x256xbf16> to vector<8x256xbf16>
    %c0_2 = arith.constant 0 : index
    %c0_3 = arith.constant 0 : index
    %c0_4 = arith.constant 0 : index
    %2 = vector.load %arg4[%c0_2, %c0_3, %c0_4] : memref<1x8x256xbf16, #tpu.memory_space<vmem>>, vector<1x8x256xbf16>
    %3 = vector.shape_cast %2 : vector<1x8x256xbf16> to vector<8x256xbf16>
    %c0_5 = arith.constant 0 : index
    %c0_6 = arith.constant 0 : index
    %c0_7 = arith.constant 0 : index
    %4 = vector.load %arg5[%c0_5, %c0_6, %c0_7] : memref<1x8x256xbf16, #tpu.memory_space<vmem>>, vector<1x8x256xbf16>
    %5 = vector.shape_cast %4 : vector<1x8x256xbf16> to vector<8x256xbf16>
    %6 = tpu.concatenate %1, %3, %5 in 1 : vector<8x256xbf16>, vector<8x256xbf16>, vector<8x256xbf16> -> vector<8x768xbf16>
    %c0_8 = arith.constant 0 : index
    %c0_9 = arith.constant 0 : index
    %7 = vector.load %arg2[%c0_8, %c0_9] : memref<3x256xbf16, #tpu.memory_space<vmem>>, vector<1x256xbf16>
    %c1 = arith.constant 1 : index
    %c0_10 = arith.constant 0 : index
    %8 = vector.load %arg2[%c1, %c0_10] : memref<3x256xbf16, #tpu.memory_space<vmem>>, vector<1x256xbf16>
    %c2 = arith.constant 2 : index
    %c0_11 = arith.constant 0 : index
    %9 = vector.load %arg2[%c2, %c0_11] : memref<3x256xbf16, #tpu.memory_space<vmem>>, vector<1x256xbf16>
    %cst = arith.constant 0.000000e+00 : f32
    %10 = vector.broadcast %cst : f32 to vector<64x256xf32>
    %11 = vector.extract_strided_slice %6 {offsets = [0, 239], sizes = [8, 256], strides = [1, 1]} : vector<8x768xbf16> to vector<8x256xbf16>
    %12 = vector.broadcast %7 : vector<1x256xbf16> to vector<8x256xbf16>
    %13 = arith.mulf %11, %12 : vector<8x256xbf16>
    %c0_12 = arith.constant 0 : index
    %c0_13 = arith.constant 0 : index
    %c0_14 = arith.constant 0 : index
    %14 = vector.load %arg6[%c0_12, %c0_13, %c0_14] : memref<9x64x8xbf16, #tpu.memory_space<vmem>>, vector<1x64x8xbf16>
    %15 = vector.shape_cast %14 : vector<1x64x8xbf16> to vector<64x8xbf16>
    %cst_15 = arith.constant dense<0.000000e+00> : vector<64x256xf32>
    %16 = tpu.matmul %15, %13, %cst_15 {dimension_numbers = #tpu.dot_dimension_numbers<[1], [0], [0], [1], [0, 0, 1, 1], [], []>} : vector<64x8xbf16>, vector<8x256xbf16>, vector<64x256xf32> -> vector<64x256xf32>
    %17 = arith.addf %10, %16 : vector<64x256xf32>
    %18 = vector.extract_strided_slice %6 {offsets = [0, 240], sizes = [8, 256], strides = [1, 1]} : vector<8x768xbf16> to vector<8x256xbf16>
    %19 = vector.broadcast %8 : vector<1x256xbf16> to vector<8x256xbf16>
    %20 = arith.mulf %18, %19 : vector<8x256xbf16>
    %c1_16 = arith.constant 1 : index
    %c0_17 = arith.constant 0 : index
    %c0_18 = arith.constant 0 : index
    %21 = vector.load %arg6[%c1_16, %c0_17, %c0_18] : memref<9x64x8xbf16, #tpu.memory_space<vmem>>, vector<1x64x8xbf16>
    %22 = vector.shape_cast %21 : vector<1x64x8xbf16> to vector<64x8xbf16>
    %cst_19 = arith.constant dense<0.000000e+00> : vector<64x256xf32>
    %23 = tpu.matmul %22, %20, %cst_19 {dimension_numbers = #tpu.dot_dimension_numbers<[1], [0], [0], [1], [0, 0, 1, 1], [], []>} : vector<64x8xbf16>, vector<8x256xbf16>, vector<64x256xf32> -> vector<64x256xf32>
    %24 = arith.addf %17, %23 : vector<64x256xf32>
    %25 = vector.extract_strided_slice %6 {offsets = [0, 241], sizes = [8, 256], strides = [1, 1]} : vector<8x768xbf16> to vector<8x256xbf16>
    %26 = vector.broadcast %9 : vector<1x256xbf16> to vector<8x256xbf16>
    %27 = arith.mulf %25, %26 : vector<8x256xbf16>
    %c2_20 = arith.constant 2 : index
    %c0_21 = arith.constant 0 : index
    %c0_22 = arith.constant 0 : index
    %28 = vector.load %arg6[%c2_20, %c0_21, %c0_22] : memref<9x64x8xbf16, #tpu.memory_space<vmem>>, vector<1x64x8xbf16>
    %29 = vector.shape_cast %28 : vector<1x64x8xbf16> to vector<64x8xbf16>
    %cst_23 = arith.constant dense<0.000000e+00> : vector<64x256xf32>
    %30 = tpu.matmul %29, %27, %cst_23 {dimension_numbers = #tpu.dot_dimension_numbers<[1], [0], [0], [1], [0, 0, 1, 1], [], []>} : vector<64x8xbf16>, vector<8x256xbf16>, vector<64x256xf32> -> vector<64x256xf32>
    %31 = arith.addf %24, %30 : vector<64x256xf32>
    %32 = vector.extract_strided_slice %6 {offsets = [0, 255], sizes = [8, 256], strides = [1, 1]} : vector<8x768xbf16> to vector<8x256xbf16>
    %33 = vector.broadcast %7 : vector<1x256xbf16> to vector<8x256xbf16>
    %34 = arith.mulf %32, %33 : vector<8x256xbf16>
    %c3 = arith.constant 3 : index
    %c0_24 = arith.constant 0 : index
    %c0_25 = arith.constant 0 : index
    %35 = vector.load %arg6[%c3, %c0_24, %c0_25] : memref<9x64x8xbf16, #tpu.memory_space<vmem>>, vector<1x64x8xbf16>
    %36 = vector.shape_cast %35 : vector<1x64x8xbf16> to vector<64x8xbf16>
    %cst_26 = arith.constant dense<0.000000e+00> : vector<64x256xf32>
    %37 = tpu.matmul %36, %34, %cst_26 {dimension_numbers = #tpu.dot_dimension_numbers<[1], [0], [0], [1], [0, 0, 1, 1], [], []>} : vector<64x8xbf16>, vector<8x256xbf16>, vector<64x256xf32> -> vector<64x256xf32>
    %38 = arith.addf %31, %37 : vector<64x256xf32>
    %39 = vector.extract_strided_slice %6 {offsets = [0, 256], sizes = [8, 256], strides = [1, 1]} : vector<8x768xbf16> to vector<8x256xbf16>
    %40 = vector.broadcast %8 : vector<1x256xbf16> to vector<8x256xbf16>
    %41 = arith.mulf %39, %40 : vector<8x256xbf16>
    %c4 = arith.constant 4 : index
    %c0_27 = arith.constant 0 : index
    %c0_28 = arith.constant 0 : index
    %42 = vector.load %arg6[%c4, %c0_27, %c0_28] : memref<9x64x8xbf16, #tpu.memory_space<vmem>>, vector<1x64x8xbf16>
    %43 = vector.shape_cast %42 : vector<1x64x8xbf16> to vector<64x8xbf16>
    %cst_29 = arith.constant dense<0.000000e+00> : vector<64x256xf32>
    %44 = tpu.matmul %43, %41, %cst_29 {dimension_numbers = #tpu.dot_dimension_numbers<[1], [0], [0], [1], [0, 0, 1, 1], [], []>} : vector<64x8xbf16>, vector<8x256xbf16>, vector<64x256xf32> -> vector<64x256xf32>
    %45 = arith.addf %38, %44 : vector<64x256xf32>
    %46 = vector.extract_strided_slice %6 {offsets = [0, 257], sizes = [8, 256], strides = [1, 1]} : vector<8x768xbf16> to vector<8x256xbf16>
    %47 = vector.broadcast %9 : vector<1x256xbf16> to vector<8x256xbf16>
    %48 = arith.mulf %46, %47 : vector<8x256xbf16>
    %c5 = arith.constant 5 : index
    %c0_30 = arith.constant 0 : index
    %c0_31 = arith.constant 0 : index
    %49 = vector.load %arg6[%c5, %c0_30, %c0_31] : memref<9x64x8xbf16, #tpu.memory_space<vmem>>, vector<1x64x8xbf16>
    %50 = vector.shape_cast %49 : vector<1x64x8xbf16> to vector<64x8xbf16>
    %cst_32 = arith.constant dense<0.000000e+00> : vector<64x256xf32>
    %51 = tpu.matmul %50, %48, %cst_32 {dimension_numbers = #tpu.dot_dimension_numbers<[1], [0], [0], [1], [0, 0, 1, 1], [], []>} : vector<64x8xbf16>, vector<8x256xbf16>, vector<64x256xf32> -> vector<64x256xf32>
    %52 = arith.addf %45, %51 : vector<64x256xf32>
    %53 = vector.extract_strided_slice %6 {offsets = [0, 271], sizes = [8, 256], strides = [1, 1]} : vector<8x768xbf16> to vector<8x256xbf16>
    %54 = vector.broadcast %7 : vector<1x256xbf16> to vector<8x256xbf16>
    %55 = arith.mulf %53, %54 : vector<8x256xbf16>
    %c6 = arith.constant 6 : index
    %c0_33 = arith.constant 0 : index
    %c0_34 = arith.constant 0 : index
    %56 = vector.load %arg6[%c6, %c0_33, %c0_34] : memref<9x64x8xbf16, #tpu.memory_space<vmem>>, vector<1x64x8xbf16>
    %57 = vector.shape_cast %56 : vector<1x64x8xbf16> to vector<64x8xbf16>
    %cst_35 = arith.constant dense<0.000000e+00> : vector<64x256xf32>
    %58 = tpu.matmul %57, %55, %cst_35 {dimension_numbers = #tpu.dot_dimension_numbers<[1], [0], [0], [1], [0, 0, 1, 1], [], []>} : vector<64x8xbf16>, vector<8x256xbf16>, vector<64x256xf32> -> vector<64x256xf32>
    %59 = arith.addf %52, %58 : vector<64x256xf32>
    %60 = vector.extract_strided_slice %6 {offsets = [0, 272], sizes = [8, 256], strides = [1, 1]} : vector<8x768xbf16> to vector<8x256xbf16>
    %61 = vector.broadcast %8 : vector<1x256xbf16> to vector<8x256xbf16>
    %62 = arith.mulf %60, %61 : vector<8x256xbf16>
    %c7 = arith.constant 7 : index
    %c0_36 = arith.constant 0 : index
    %c0_37 = arith.constant 0 : index
    %63 = vector.load %arg6[%c7, %c0_36, %c0_37] : memref<9x64x8xbf16, #tpu.memory_space<vmem>>, vector<1x64x8xbf16>
    %64 = vector.shape_cast %63 : vector<1x64x8xbf16> to vector<64x8xbf16>
    %cst_38 = arith.constant dense<0.000000e+00> : vector<64x256xf32>
    %65 = tpu.matmul %64, %62, %cst_38 {dimension_numbers = #tpu.dot_dimension_numbers<[1], [0], [0], [1], [0, 0, 1, 1], [], []>} : vector<64x8xbf16>, vector<8x256xbf16>, vector<64x256xf32> -> vector<64x256xf32>
    %66 = arith.addf %59, %65 : vector<64x256xf32>
    %67 = vector.extract_strided_slice %6 {offsets = [0, 273], sizes = [8, 256], strides = [1, 1]} : vector<8x768xbf16> to vector<8x256xbf16>
    %68 = vector.broadcast %9 : vector<1x256xbf16> to vector<8x256xbf16>
    %69 = arith.mulf %67, %68 : vector<8x256xbf16>
    %c8 = arith.constant 8 : index
    %c0_39 = arith.constant 0 : index
    %c0_40 = arith.constant 0 : index
    %70 = vector.load %arg6[%c8, %c0_39, %c0_40] : memref<9x64x8xbf16, #tpu.memory_space<vmem>>, vector<1x64x8xbf16>
    %71 = vector.shape_cast %70 : vector<1x64x8xbf16> to vector<64x8xbf16>
    %cst_41 = arith.constant dense<0.000000e+00> : vector<64x256xf32>
    %72 = tpu.matmul %71, %69, %cst_41 {dimension_numbers = #tpu.dot_dimension_numbers<[1], [0], [0], [1], [0, 0, 1, 1], [], []>} : vector<64x8xbf16>, vector<8x256xbf16>, vector<64x256xf32> -> vector<64x256xf32>
    %73 = arith.addf %66, %72 : vector<64x256xf32>
    %c0_42 = arith.constant 0 : index
    %c0_43 = arith.constant 0 : index
    %74 = vector.load %arg7[%c0_42, %c0_43] : memref<64x1xf32, #tpu.memory_space<vmem>>, vector<64x1xf32>
    %75 = vector.broadcast %74 : vector<64x1xf32> to vector<64x256xf32>
    %76 = arith.mulf %73, %75 : vector<64x256xf32>
    %c0_44 = arith.constant 0 : index
    %c0_45 = arith.constant 0 : index
    %77 = vector.load %arg8[%c0_44, %c0_45] : memref<64x1xf32, #tpu.memory_space<vmem>>, vector<64x1xf32>
    %78 = vector.broadcast %77 : vector<64x1xf32> to vector<64x256xf32>
    %79 = arith.addf %76, %78 : vector<64x256xf32>
    %cst_46 = arith.constant 0.000000e+00 : f32
    %80 = vector.broadcast %cst_46 : f32 to vector<64x256xf32>
    %81 = arith.maximumf %79, %80 : vector<64x256xf32>
    %c0_47 = arith.constant 0 : index
    %c0_48 = arith.constant 0 : index
    %c0_49 = arith.constant 0 : index
    %82 = vector.load %arg9[%c0_47, %c0_48, %c0_49] : memref<1x64x256xf32, #tpu.memory_space<vmem>>, vector<1x64x256xf32>
    %83 = vector.shape_cast %82 : vector<1x64x256xf32> to vector<64x256xf32>
    %84 = vector.shape_cast %81 : vector<64x256xf32> to vector<1x64x256xf32>
    tpu.vector_store %arg9[%c0_47, %c0_48, %c0_49], %84 {strides = array<i32>} : memref<1x64x256xf32, #tpu.memory_space<vmem>>, vector<1x64x256xf32>,
    return
  }
  func.func @transform_0(%arg0: i32, %arg1: i32) -> (i32, i32) {
    %c0_i32 = arith.constant 0 : i32
    %c0_i32_0 = arith.constant 0 : i32
    return %c0_i32, %arg1 : i32, i32
  }
  func.func @transform_1(%arg0: i32, %arg1: i32) -> (i32, i32, i32) {
    %c0_i32 = arith.constant 0 : i32
    %c0_i32_0 = arith.constant 0 : i32
    return %arg0, %c0_i32, %arg1 : i32, i32, i32
  }
  func.func @transform_2(%arg0: i32, %arg1: i32) -> (i32, i32, i32) {
    %c1_i32 = arith.constant 1 : i32
    %0 = arith.addi %arg1, %c1_i32 : i32
    %c0_i32 = arith.constant 0 : i32
    %c0_i32_0 = arith.constant 0 : i32
    return %arg0, %c0_i32, %0 : i32, i32, i32
  }
  func.func @transform_3(%arg0: i32, %arg1: i32) -> (i32, i32, i32) {
    %c2_i32 = arith.constant 2 : i32
    %0 = arith.addi %arg1, %c2_i32 : i32
    %c0_i32 = arith.constant 0 : i32
    %c0_i32_0 = arith.constant 0 : i32
    return %arg0, %c0_i32, %0 : i32, i32, i32
  }
  func.func @transform_4(%arg0: i32, %arg1: i32) -> (i32, i32, i32) {
    %c0_i32 = arith.constant 0 : i32
    %c0_i32_0 = arith.constant 0 : i32
    %c0_i32_1 = arith.constant 0 : i32
    %c0_i32_2 = arith.constant 0 : i32
    return %c0_i32, %c0_i32_0, %c0_i32_1 : i32, i32, i32
  }
  func.func @transform_5(%arg0: i32, %arg1: i32) -> (i32, i32) {
    %c0_i32 = arith.constant 0 : i32
    %c0_i32_0 = arith.constant 0 : i32
    %c0_i32_1 = arith.constant 0 : i32
    return %c0_i32, %c0_i32_0 : i32, i32
  }
  func.func @transform_6(%arg0: i32, %arg1: i32) -> (i32, i32) {
    %c0_i32 = arith.constant 0 : i32
    %c0_i32_0 = arith.constant 0 : i32
    %c0_i32_1 = arith.constant 0 : i32
    return %c0_i32, %c0_i32_0 : i32, i32
  }
  func.func @transform_7(%arg0: i32, %arg1: i32) -> (i32, i32, i32) {
    %c0_i32 = arith.constant 0 : i32
    %c0_i32_0 = arith.constant 0 : i32
    return %arg0, %c0_i32, %arg1 : i32, i32, i32
  }
}

</mosaic_0001>

<bundles_post_ra>
// kernel: resnet_start_single.3
= control target key start
LH: loop header
LB: loop body
LE: loop exit
PB: predicated region body
PF: predicated region fallthrough
CT: control target
= control target key end

     0   :  { %s2640_s24 = smov 0   ;;  %s2642_s25 = smov 0   ;;  %s3101_s0 = inlined_call_operand.vmem [shape: bf16[3,256], index: 0, kind: input, shape index: {}]   ;;  %s3102_s1 = inlined_call_operand.vmem [shape: bf16[2,8,768], index: 1, kind: input, shape index: {}, may-alias: {1,2,3}]   ;;  %s3103_s2 = inlined_call_operand.vmem [shape: bf16[2,8,768], index: 2, kind: input, shape index: {}, may-alias: {1,2,3}]   ;;  %s3104_s3 = inlined_call_operand.vmem [shape: bf16[2,8,768], index: 3, kind: input, shape index: {}, may-alias: {1,2,3}]   ;;  %s3105_s4 = inlined_call_operand.vmem [shape: bf16[9,64,8], index: 4, kind: input, shape index: {}]   ;;  %s3106_s5 = inlined_call_operand.vmem [shape: f32[64,1], index: 5, kind: input, shape index: {}]   ;;  %s3107_s6 = inlined_call_operand.vmem [shape: f32[64,1], index: 6, kind: input, shape index: {}]   ;;  %s3108_s7 = inlined_call_operand.vmem [shape: f32[2,64,256], index: 7, kind: output, shape index: {}]  }
   0x1   :  { %s2644_s26 = smov 0  }
   0x2 LB: > { %s29_s27 = sadd.s32 1, %s2585_s25  ;;  %p2195_p0 = scmp.ge.s32.totalorder %s2589_s26, 1  ;;  %s2589_s26 = sphi %s2644_s26, %s17_s26   ;;  %s2585_s25 = sphi %s2642_s25, %s3110_s25   ;;  %s2581_s24 = sphi %s2640_s24, %s3109_s24  }
   0x3   : > { %p31_p1 = scmp.ge.s32.totalorder %s29_s27, 2  ;;  %p311_p2 = scmp.lt.s32.totalorder %s2589_s26, 3 }
   0x5   : > { %s3112_s27 = smov (%p31_p1, %s29_s27), 0  ;;  %p312_p3 = pnand %p2195_p0, %p311_p2 }
   0x6   : > { %v2205_v0 = vld.sshfl [vmem:[%s3101_s0] sm:$0x11 pattern:$0x76325410] (!%p312_p3)  ;;  %v459_v1 = vlaneseq (!%p312_p3)  ;;  %p383_p4 = scmp.lt.s32.totalorder (!%p312_p3), %s2581_s24, 1  ;;  %s2591_s10 = smov (!%p312_p3), 112  }
   0x7   : > { %315 = sbr.rel (%p312_p3) target bundleno = 677 (0x2a5), region = 48  ;;  %v492_v2 = vshrl.u32 (!%p312_p3), %v2205_v0, 16  ;;  %v455_v3 = vcombine.high (!%p312_p3), %v2205_v0, %v2205_v0  ;;  %v2232_v4 = vld.sshfl [vmem:[%s3101_s0] sm:$0x22 pattern:$0x76325410] (!%p312_p3)  ;;  %v457_v16 = vpack.i.b16 (!%p312_p3), %v2205_v0, %v2205_v0 }
   0x8   : > { %v460_v5 = vshrl.u32 (!%p312_p3), %v459_v1, 7  ;;  %v787_v6 = vpack.i.b16 (!%p312_p3), %v2232_v4, %v2232_v4  ;;  %v785_v7 = vcombine.high (!%p312_p3), %v2232_v4, %v2232_v4  ;;  %s2592_s11 = smov (!%p312_p3), 1   ;;  %s2593_s19 = smov (!%p312_p3), 111   ;;  %vm512_vm0 = vcmask (!%p312_p3), 916480   ;;  %v2531_v37 = vld [vmem:[%s3105_s4 + $0x80] sm:$0xff] (!%p312_p3)   ;;  %v2533_v52 = vld [vmem:[%s3105_s4 + $0x88] sm:$0xff] (!%p312_p3)  }
   0x9   : > { %v493_v8 = vpack.i.b16 (!%p312_p3), %v492_v2, %v492_v2  ;;  %v499_v9 = vshrl.u32 (!%p312_p3), %v455_v3, 16  ;;  %v464_v19 = vpack.i.b16 (!%p312_p3), %v455_v3, %v455_v3  ;;  %s2594_s20 = smov (!%p312_p3), 15   ;;  %s2595_s29 = smov (!%p312_p3), 16   ;;  %vm574_vm1 = vcmask (!%p312_p3), 1043456   ;;  %v2532_v63 = vld [vmem:[%s3105_s4 + $0x20] sm:$0xff] (!%p312_p3)  }
   0xa   : > { %v461_v10 = vsub.s32 (!%p312_p3), 0, %v460_v5  ;;  %v791_v11 = vsub.s32 (!%p312_p3), 1, %v460_v5  ;;  %v794_v12 = vpack.i.b16 (!%p312_p3), %v785_v7, %v785_v7  ;;  %vm1012_vm2 = vcmask (!%p312_p3), 7168   ;;  %s2598_s12 = smov (!%p312_p3), 127   ;;  %s2599_s13 = smov (!%p312_p3), 17  }
   0xb   : > { %v500_v13 = vpack.i.b16 (!%p312_p3), %v499_v9, %v499_v9  ;;  %v2596_v39 = vmov (!%p312_p3), 0   ;;  %vm561_vm3 = vcmask (!%p312_p3), 64512   ;;  %vm476_vm4 = vcmask (!%p312_p3), 908288  }
   0xc   : > { %v2666_v14 = vrot.slane (!%p312_p3), %v493_v8, %v461_v10  ;;  %v2668_v15 = vrot.slane (!%p312_p3), %v787_v6, %v791_v11  ;;  %v2677_v18 = vrot.slane (!%p312_p3), %v794_v12, %v791_v11  ;;  %v2691_v20 = vrot.slane (!%p312_p3), %v457_v16, %v461_v10  ;;  %1203 = vmatprep.mubr.bf16.mxu0 (!%p312_p3), %v2596_v39 }
   0xd   : > { %v2673_v17 = vrot.slane (!%p312_p3), %v500_v13, %v461_v10  ;;  %v2693_v21 = vrot.slane (!%p312_p3), %v464_v19, %v461_v10  ;;  %613 = vmatprep.mubr.bf16.mxu1 (!%p312_p3), %v2596_v39  ;;  %2526 = vset.pattern.permute.xlu1 (!%p312_p3), %v2596_v39  ;;  %vm852_vm5 = vcmask (!%p312_p3), 121856   ;;  %vm558_vm6 = vcmask (!%p312_p3), 130048   ;;  %v2535_v10 = vld [vmem:[%s3105_s4 + $0x28] sm:$0xff] (!%p312_p3)  }
   0xe   : > { %s3114_s24 = smov (!%p383_p4, %s2581_s24), 1  ;;  %508 = vrot.lane.b32.xlu0 %v2666_v14, %s2591_s10  ;;  %1260 = vrot.lane.b32.xlu1 %v2668_v15, %s2592_s11  ;;  %vm806_vm7 = vcmask 924672   ;;  %vm966_vm8 = vcmask 1039360   ;;  %vm683_vm9 = vcmask 138240  }
   0xf   : > { %s2489_s9 = smul.u32 24, %s3114_s24  ;;  %2525 = vset.pattern.permute.xlu0 %v2596_v39  ;;  %s2358_s23 = sshll.u32 %s3114_s24, 7 }
  0x11   : > { %s390_s14 = scalar_lea.vmem %s3102_s1, %s2489_s9  ;;  %s2357_s15 = sadd.s32 16, %s2489_s9 }
  0x12   : > { %s2685_s18 = scalar_lea.vmem %s3104_s3, %s2357_s15  ;;  %510 = vrot.lane.b32.xlu0 %v2673_v17, %s2591_s10  ;;  %1262 = vrot.lane.b32.xlu1 %v2677_v18, %s2592_s11  ;;  %s2355_s21 = sadd.s32 8, %s2489_s9  ;;  %v2706_v23 = vld [vmem:[%s390_s14 + $0x4] ss:$0 sps:$4 sm:$0xff]  }
  0x13   : > { %s401_s28 = scalar_lea.vmem %s3103_s2, %s2355_s21  ;;  %s2597_s9 = smov 113   ;;  %v2747_v42 = vld [vmem:[%s2685_s18] ss:$0 sps:$4 sm:$0xff]  }
  0x14   : > { %v428_v22 = vld [vmem:[%s401_s28] sm:$0xff] }
  0x15   : > { %v2708_v25 = vcombine.low %v428_v22, %v428_v22  ;;  %v2710_v26 = vcombine.high %v428_v22, %v428_v22 }
  0x16   : > { %472 = vrot.lane.b32.xlu0 %v2691_v20, %s2593_s19  ;;  %474 = vrot.lane.b32.xlu1 %v2693_v21, %s2593_s19 }
  0x17   : > { %v2715_v29 = vmul.bf16 %v2710_v26, %v2673_v17  ;;  %v1122_v30 = vmul.bf16 %v2708_v25, %v2666_v14 }
  0x19   : > { %2279 = vmatprep.subr.msk.bf16.mxu0 %vm574_vm1, %v2715_v29  ;;  %v2723_v32 = vsel %vm574_vm1, %v1122_v30, 0 }
  0x1a   : > { %1418 = vrot.lane.b32.xlu0 %v2691_v20, %s2594_s20  ;;  %1420 = vrot.lane.b32.xlu1 %v2693_v21, %s2594_s20 }
  0x1b   : > { %1172 = vmatpush1.bf16.msra.mxu0 %v2723_v32 }
  0x1e   : > { %2280 = vmatmul.mubr.msk.bf16.vlgmr.msra.gmra.mrb[0].mxu0 %vm561_vm3, %v2531_v37 }
  0x1f   : > { %1213 = vmatprep.mubr.bf16.mxu0 %v2596_v39 }
  0x26   : > { %2281 = vmatmul.mubr.msk.bf16.gmra.mrb[4].mxu0 %vm561_vm3, %v2533_v52 }
  0x27   : > { %1361 = vmatprep.mubr.bf16.mxu0 %v2596_v39 }
  0x80   : > { %v509_v24 = vpop.permute.xlu0 %508  ;;  %v1261_v27 = vpop.permute.xlu1 %1260 }
  0x81   : > { %v517_v28 = vmul.bf16 %v2706_v23, %v509_v24  ;;  %v1268_v41 = vmul.bf16 %v2708_v25, %v1261_v27 }
  0x83   : > { %552 = vrot.lane.b32.xlu0 %v517_v28, %s2595_s29 }
  0x84   : > { %v511_v31 = vpop.permute.xlu0 %510  ;;  %v1263_v35 = vpop.permute.xlu1 %1262 }
  0x85   : > { %v513_v33 = vsel %vm512_vm0, %v509_v24, %v511_v31  ;;  %v519_v34 = vmul.bf16 %v2710_v26, %v511_v31  ;;  %v1264_v38 = vsel %vm1012_vm2, %v1261_v27, %v1263_v35  ;;  %v1270_v43 = vmul.bf16 %v2747_v42, %v1263_v35  ;;  %v2536_v24 = vld [vmem:[%s3105_s4 + $0x30] sm:$0xff]   ;;  %v2537_v31 = vld [vmem:[%s3105_s4 + $0xa8] sm:$0xff]  }
  0x86   : > { %v518_v36 = vmul.bf16 %v2708_v25, %v513_v33  ;;  %v1269_v40 = vmul.bf16 %v2710_v26, %v1264_v38 }
  0x87   : > { %556 = vrot.lane.b32.xlu0 %v519_v34, %s2595_s29 }
  0x88   : > { %554 = vrot.lane.b32.xlu1 %v518_v36, %s2595_s29  ;;  %v473_v44 = vpop.permute.xlu0 %472  ;;  %v475_v45 = vpop.permute.xlu1 %474 }
  0x89   : > { %v481_v46 = vmul.bf16 %v2706_v23, %v473_v44  ;;  %v477_v47 = vsel %vm476_vm4, %v473_v44, %v475_v45  ;;  %v483_v48 = vmul.bf16 %v2710_v26, %v475_v45 }
  0x8a   : > { %v482_v49 = vmul.bf16 %v2708_v25, %v477_v47 }
  0x8b   : > { %804 = vrot.lane.b32.xlu0 %v2677_v18, %s2597_s9 }
  0x8c   : > { %802 = vrot.lane.b32.xlu1 %v2668_v15, %s2597_s9  ;;  %v1419_v50 = vpop.permute.xlu0 %1418  ;;  %v1421_v51 = vpop.permute.xlu1 %1420 }
  0x8d   : > { %v1422_v53 = vsel %vm852_vm5, %v1419_v50, %v1421_v51  ;;  %v1426_v55 = vmul.bf16 %v2708_v25, %v1419_v50  ;;  %v1428_v56 = vmul.bf16 %v2747_v42, %v1421_v51 }
  0x8e   : > { %v1427_v54 = vmul.bf16 %v2710_v26, %v1422_v53 }
  0x8f   : > { %1305 = vrot.lane.b32.xlu0 %v1269_v40, %s2598_s12 }
  0x90   : > { %1303 = vrot.lane.b32.xlu1 %v1268_v41, %s2598_s12 }
  0x93   : > { %1576 = vrot.lane.b32.xlu0 %v2666_v14, %s2595_s29 }
  0x94   : > { %1307 = vrot.lane.b32.xlu1 %v1270_v43, %s2598_s12 }
  0x97   : > { %677 = vrot.lane.b32.xlu0 %v481_v46, %s2599_s13 }
  0x98   : > { %1578 = vrot.lane.b32.xlu1 %v2673_v17, %s2595_s29  ;;  %s3066_s29 = scalar_lea.vmem %s3108_s7, %s2358_s23 }
  0x9b   : > { %681 = vrot.lane.b32.xlu0 %v483_v48, %s2599_s13  ;;  %v2539_v48 = vld [vmem:[%s3105_s4 + $0xb0] sm:$0xff]  }
  0x9c   : > { %679 = vrot.lane.b32.xlu1 %v482_v49, %s2599_s13 }
  0x9f   : > { %964 = vrot.lane.b32.xlu0 %v2693_v21, %s2598_s12 }
  0xa0   : > { %962 = vrot.lane.b32.xlu1 %v2691_v20, %s2598_s12 }
  0xa3   : > { %1463 = vrot.lane.b32.xlu0 %v1427_v54, %s2597_s9  ;;  %v2541_v54 = vld [vmem:[%s3105_s4 + $0xb8] sm:$0xff]  }
  0xa4   : > { %1461 = vrot.lane.b32.xlu1 %v1426_v55, %s2597_s9  ;;  %v2544_v55 = vld [vmem:[%s3105_s4 + $0x10] sm:$0xff]  }
  0xa7   : > { %1734 = vrot.lane.b32.xlu0 %v2668_v15, %s2599_s13  ;;  %v2534_v15 = vld [vmem:[%s3105_s4 + $0xa0] sm:$0xff]  }
  0xa8   : > { %1465 = vrot.lane.b32.xlu1 %v1428_v56, %s2597_s9  ;;  %v2545_v56 = vld [vmem:[%s3105_s4 + $0xc8] sm:$0xff]  }
  0xac   : > { %1736 = vrot.lane.b32.xlu1 %v2677_v18, %s2599_s13 }
  0xf5   : > { %v553_v57 = vpop.permute.xlu0 %552 }
  0xf9   : > { %v557_v58 = vpop.permute.xlu0 %556 }
  0xfa   : > { %v555_v59 = vpop.permute.xlu1 %554 }
  0xfb   : > { %v560_v60 = vsel %vm558_vm6, %v555_v59, %v557_v58  ;;  %v559_v61 = vsel %vm558_vm6, %v553_v57, %v555_v59  ;;  %v2546_v57 = vld [vmem:[%s3105_s4 + $0x18] sm:$0xff]   ;;  %v2547_v58 = vld [vmem:[%s3105_s4 + $0xd0] sm:$0xff]  }
  0xfc   : > { %2218 = vmatprep.subr.msk.bf16.mxu1 %vm574_vm1, %v560_v60  ;;  %v576_v62 = vsel %vm574_vm1, %v559_v61, 0  ;;  %v2549_v59 = vld [vmem:[%s3105_s4 + $0xd8] sm:$0xff]   ;;  %v1893_v60 = vld [vmem:[%s3106_s5 + $0x8] sm:$0xff]  ;;  %v1892_v61 = vld [vmem:[%s3106_s5] sm:$0xff] }
  0xfd   : > { %582 = vmatpush1.bf16.msra.mxu1 %v576_v62  ;;  %v805_v0 = vpop.permute.xlu0 %804  ;;  %v1894_v62 = vld [vmem:[%s3106_s5 + $0x10] sm:$0xff] }
  0xfe   : > { %v803_v1 = vpop.permute.xlu1 %802  ;;  %v813_v5 = vmul.bf16 %v2710_v26, %v805_v0 }
  0xff   : > { %v811_v2 = vmul.bf16 %v2706_v23, %v803_v1  ;;  %v807_v3 = vsel %vm806_vm7, %v803_v1, %v805_v0  ;;  %v1896_v0 = vld [vmem:[%s3106_s5 + $0x20] sm:$0xff]  ;;  %v1897_v1 = vld [vmem:[%s3106_s5 + $0x28] sm:$0xff] }
 0x100   : > { %v812_v4 = vmul.bf16 %v2708_v25, %v807_v3  ;;  %2219 = vmatmul.mubr.msk.bf16.vlgmr.msra.gmra.mrb[0].mxu1 %vm561_vm3, %v2532_v63  ;;  %v1895_v63 = vld [vmem:[%s3106_s5 + $0x18] sm:$0xff] }
 0x101   : > { %846 = vrot.lane.b32.xlu0 %v811_v2, %s2594_s20  ;;  %v1306_v6 = vpop.permute.xlu0 %1305  ;;  %623 = vmatprep.mubr.bf16.mxu1 %v2596_v39  ;;  %v1898_v2 = vld [vmem:[%s3106_s5 + $0x30] sm:$0xff]  ;;  %v1899_v3 = vld [vmem:[%s3106_s5 + $0x38] sm:$0xff] }
 0x102   : > { %v1304_v7 = vpop.permute.xlu1 %1303  ;;  %848 = vrot.lane.b32.xlu1 %v812_v4, %s2594_s20  ;;  %v1956_v4 = vld [vmem:[%s3107_s6] sm:$0xff] }
 0x103   : > { %v1309_v8 = vsel %vm966_vm8, %v1304_v7, %v1306_v6  ;;  %v1959_v7 = vld [vmem:[%s3107_s6 + $0x18] sm:$0xff] }
 0x104   : > { %v1324_v11 = vsel %vm574_vm1, %v1309_v8, 0  ;;  %v1960_v8 = vld [vmem:[%s3107_s6 + $0x20] sm:$0xff] }
 0x105   : > { %850 = vrot.lane.b32.xlu0 %v813_v5, %s2594_s20  ;;  %v1577_v9 = vpop.permute.xlu0 %1576  ;;  %v1957_v5 = vld [vmem:[%s3107_s6 + $0x8] sm:$0xff] }
 0x106   : > { %v1308_v12 = vpop.permute.xlu1 %1307  ;;  %v1584_v13 = vmul.bf16 %v2708_v25, %v1577_v9 }
 0x107   : > { %v1310_v14 = vsel %vm966_vm8, %v1306_v6, %v1308_v12  ;;  %v1958_v6 = vld [vmem:[%s3107_s6 + $0x10] sm:$0xff] }
 0x108   : > { %2296 = vmatprep.subr.msk.bf16.mxu0 %vm574_vm1, %v1310_v14  ;;  %1619 = vrot.lane.b32.xlu1 %v1584_v13, %s2591_s10 }
 0x109   : > { %1330 = vmatpush1.bf16.msra.mxu0 %v1324_v11  ;;  %v678_v16 = vpop.permute.xlu0 %677  ;;  %2220 = vmatmul.mubr.msk.bf16.gmra.mrb[4].mxu1 %vm561_vm3, %v2535_v10  ;;  %v1962_v10 = vld [vmem:[%s3107_s6 + $0x30] sm:$0xff]  ;;  %v1963_v11 = vld [vmem:[%s3107_s6 + $0x38] sm:$0xff] }
 0x10a   : > { %v1579_v17 = vpop.permute.xlu1 %1578  ;;  %633 = vmatprep.mubr.bf16.mxu1 %v2596_v39 }
 0x10b   : > { %v1580_v18 = vsel %vm558_vm6, %v1577_v9, %v1579_v17  ;;  %v1586_v19 = vmul.bf16 %v2747_v42, %v1579_v17  ;;  %v1961_v9 = vld [vmem:[%s3107_s6 + $0x28] sm:$0xff] }
 0x10c   : > { %v1585_v20 = vmul.bf16 %v2710_v26, %v1580_v18  ;;  %2297 = vmatmul.mubr.msk.bf16.vlgmr.msra.gmra.mrb[0].mxu0 %vm561_vm3, %v2534_v15  ;;  %v2548_v18 = vld [vmem:[%s3105_s4 + $0x40] sm:$0xff]  }
 0x10d   : > { %1623 = vrot.lane.b32.xlu1 %v1586_v19, %s2591_s10  ;;  %v682_v21 = vpop.permute.xlu0 %681  ;;  %1371 = vmatprep.mubr.bf16.mxu0 %v2596_v39 }
 0x10e   : > { %1621 = vrot.lane.b32.xlu0 %v1585_v20, %s2591_s10  ;;  %v680_v22 = vpop.permute.xlu1 %679 }
 0x10f   : > { %v684_v27 = vsel %vm683_vm9, %v678_v16, %v680_v22  ;;  %v685_v28 = vsel %vm683_vm9, %v680_v22, %v682_v21 }
 0x110   : > { %v699_v30 = vsel %vm574_vm1, %v684_v27, 0  ;;  %2227 = vmatprep.subr.msk.bf16.mxu1 %vm574_vm1, %v685_v28  ;;  %v2550_v27 = vld [vmem:[%s3105_s4 + $0x48] sm:$0xff]  }
 0x111   : > { %705 = vmatpush1.bf16.msra.mxu1 %v699_v30  ;;  %v965_v33 = vpop.permute.xlu0 %964  ;;  %v2551_v30 = vld [vmem:[%s3105_s4 + $0xe0] sm:$0xff]  }
 0x112   : > { %v963_v34 = vpop.permute.xlu1 %962  ;;  %2221 = vmatmul.mubr.msk.bf16.gmra.mrb[8].mxu1 %vm561_vm3, %v2536_v24  ;;  %v973_v38 = vmul.bf16 %v2710_v26, %v965_v33 }
 0x113   : > { %v971_v35 = vmul.bf16 %v2706_v23, %v963_v34  ;;  %v967_v36 = vsel %vm966_vm8, %v963_v34, %v965_v33  ;;  %643 = vmatprep.mubr.bf16.mxu1 %v2596_v39  ;;  %v2538_v23 = vld [vmem:[%s3105_s4 + $0x38] sm:$0xff]   ;;  %v2552_v34 = vld [vmem:[%s3105_s4 + $0x50] sm:$0xff]  }
 0x114   : > { %v972_v37 = vmul.bf16 %v2708_v25, %v967_v36  ;;  %2298 = vmatmul.mubr.msk.bf16.gmra.mrb[4].mxu0 %vm561_vm3, %v2537_v31  ;;  %v2553_v36 = vld [vmem:[%s3105_s4 + $0xe8] sm:$0xff]  }
 0x115   : > { %1006 = vrot.lane.b32.xlu0 %v971_v35, %s2592_s11  ;;  %v1464_v40 = vpop.permute.xlu0 %1463  ;;  %1381 = vmatprep.mubr.bf16.mxu0 %v2596_v39 }
 0x116   : > { %1008 = vrot.lane.b32.xlu1 %v972_v37, %s2592_s11  ;;  %v1462_v41 = vpop.permute.xlu1 %1461 }
 0x117   : > { %v1467_v43 = vsel %vm806_vm7, %v1462_v41, %v1464_v40 }
 0x118   : > { %v1482_v45 = vsel %vm574_vm1, %v1467_v43, 0  ;;  %v2555_v43 = vld [vmem:[%s3105_s4 + $0xf0] sm:$0xff]  }
 0x119   : > { %1010 = vrot.lane.b32.xlu0 %v973_v38, %s2592_s11  ;;  %v1735_v44 = vpop.permute.xlu0 %1734 }
 0x11a   : > { %v1466_v46 = vpop.permute.xlu1 %1465  ;;  %v1742_v47 = vmul.bf16 %v2708_v25, %v1735_v44  ;;  %2222 = vmatmul.mubr.msk.bf16.gmra.mrb[12].mxu1 %vm561_vm3, %v2538_v23  ;;  %v2540_v25 = vld [vmem:[%s3105_s4] sm:$0xff]   ;;  %v2554_v23 = vld [vmem:[%s3105_s4 + $0x58] sm:$0xff]  }
 0x11b   : > { %v1468_v49 = vsel %vm806_vm7, %v1464_v40, %v1466_v46  ;;  %736 = vmatprep.mubr.bf16.mxu1 %v2596_v39 }
 0x11c   : > { %1777 = vrot.lane.b32.xlu1 %v1742_v47, %s2593_s19  ;;  %2313 = vmatprep.subr.msk.bf16.mxu0 %vm574_vm1, %v1468_v49  ;;  %v2557_v49 = vld [vmem:[%s3105_s4 + $0xf8] sm:$0xff]  }
 0x11d   : > { %1488 = vmatpush1.bf16.msra.mxu0 %v1482_v45 }
 0x11e   : > { %v1737_v50 = vpop.permute.xlu1 %1736  ;;  %2299 = vmatmul.mubr.msk.bf16.gmra.mrb[8].mxu0 %vm561_vm3, %v2539_v48  ;;  %v2556_v48 = vld [vmem:[%s3105_s4 + $0x60] sm:$0xff]  }
 0x11f   : > { %v1738_v51 = vsel %vm683_vm9, %v1735_v44, %v1737_v50  ;;  %v1744_v52 = vmul.bf16 %v2747_v42, %v1737_v50  ;;  %1391 = vmatprep.mubr.bf16.mxu0 %v2596_v39  ;;  %v2542_v42 = vld [vmem:[%s3105_s4 + $0x8] sm:$0xff]  }
 0x120   : > { %v1743_v53 = vmul.bf16 %v2710_v26, %v1738_v51  ;;  %v2543_v26 = vld [vmem:[%s3105_s4 + $0xc0] sm:$0xff]   ;;  %v2558_v50 = vld [vmem:[%s3105_s4 + $0x68] sm:$0xff]  }
 0x121   : > { %1781 = vrot.lane.b32.xlu1 %v1744_v52, %s2593_s19  ;;  %v2561_v51 = vld [vmem:[%s3105_s4 + $0x108] sm:$0xff]   ;;  %v2562_v52 = vld [vmem:[%s3105_s4 + $0x78] sm:$0xff]  }
 0x122   : > { %1779 = vrot.lane.b32.xlu0 %v1743_v53, %s2593_s19  ;;  %2228 = vmatmul.mubr.msk.bf16.vlgmr.msra.gmra.mrb[0].mxu1 %vm561_vm3, %v2540_v25  ;;  %v2559_v25 = vld [vmem:[%s3105_s4 + $0x100] sm:$0xff]   ;;  %v2563_v53 = vld [vmem:[%s3105_s4 + $0x110] sm:$0xff]  }
 0x123   : > { %746 = vmatprep.mubr.bf16.mxu1 %v2596_v39 }
 0x125   : > { %1907 = vperm.xlu1 %2526, %v1893_v60  }
 0x126   : > { %2300 = vmatmul.mubr.msk.bf16.gmra.mrb[12].mxu0 %vm561_vm3, %v2541_v54  ;;  %1902 = vperm.xlu0 %2525, %v1892_v61   ;;  %v2564_v54 = vld [vmem:[%s3105_s4 + $0x90] sm:$0xff]  }
 0x127   : > { %1519 = vmatprep.mubr.bf16.mxu0 %v2596_v39 }
 0x129   : > { %1912 = vperm.xlu1 %2526, %v1894_v62  }
 0x12a   : > { %2229 = vmatmul.mubr.msk.bf16.gmra.mrb[4].mxu1 %vm561_vm3, %v2542_v42  ;;  %1917 = vperm.xlu0 %2525, %v1895_v63   ;;  %v2565_v42 = vld [vmem:[%s3105_s4 + $0x118] sm:$0xff]  }
 0x12b   : > { %756 = vmatprep.mubr.bf16.mxu1 %v2596_v39 }
 0x12d   : > { %1922 = vperm.xlu1 %2526, %v1896_v0  }
 0x12e   : > { %2314 = vmatmul.mubr.msk.bf16.vlgmr.msra.gmra.mrb[0].mxu0 %vm561_vm3, %v2543_v26  ;;  %1927 = vperm.xlu0 %2525, %v1897_v1   ;;  %v2566_v26 = vld [vmem:[%s3105_s4 + $0x98] sm:$0xff]  }
 0x12f   : > { %1529 = vmatprep.mubr.bf16.mxu0 %v2596_v39 }
 0x131   : > { %1932 = vperm.xlu1 %2526, %v1898_v2  }
 0x132   : > { %2230 = vmatmul.mubr.msk.bf16.gmra.mrb[8].mxu1 %vm561_vm3, %v2544_v55  ;;  %1937 = vperm.xlu0 %2525, %v1899_v3  }
 0x133   : > { %766 = vmatprep.mubr.bf16.mxu1 %v2596_v39 }
 0x135   : > { %1966 = vperm.xlu1 %2526, %v1956_v4  }
 0x136   : > { %2315 = vmatmul.mubr.msk.bf16.gmra.mrb[4].mxu0 %vm561_vm3, %v2545_v56  ;;  %1971 = vperm.xlu0 %2525, %v1957_v5  }
 0x137   : > { %1539 = vmatprep.mubr.bf16.mxu0 %v2596_v39 }
 0x139   : > { %1976 = vperm.xlu1 %2526, %v1958_v6  }
 0x13a   : > { %2231 = vmatmul.mubr.msk.bf16.gmra.mrb[12].mxu1 %vm561_vm3, %v2546_v57  ;;  %1981 = vperm.xlu0 %2525, %v1959_v7  }
 0x13b   : > { %905 = vmatprep.mubr.bf16.mxu1 %v2596_v39 }
 0x13d   : > { %1986 = vperm.xlu1 %2526, %v1960_v8  }
 0x13e   : > { %2316 = vmatmul.mubr.msk.bf16.gmra.mrb[8].mxu0 %vm561_vm3, %v2547_v58  ;;  %1991 = vperm.xlu0 %2525, %v1961_v9  }
 0x13f   : > { %1549 = vmatprep.mubr.bf16.mxu0 %v2596_v39 }
 0x141   : > { %1996 = vperm.xlu1 %2526, %v1962_v10  }
 0x142   : > { %2001 = vperm.xlu0 %2525, %v1963_v11  }
 0x146   : > { %2317 = vmatmul.mubr.msk.bf16.gmra.mrb[12].mxu0 %vm561_vm3, %v2549_v59 }
 0x147   : > { %1677 = vmatprep.mubr.bf16.mxu0 %v2596_v39 }
 0x173   : > { %v847_v12 = vpop.permute.xlu0 %846 }
 0x174   : > { %v849_v13 = vpop.permute.xlu1 %848 }
 0x175   : > { %v853_v14 = vsel %vm852_vm5, %v847_v12, %v849_v13 }
 0x176   : > { %v868_v17 = vsel %vm574_vm1, %v853_v14, 0 }
 0x177   : > { %v851_v15 = vpop.permute.xlu0 %850 }
 0x178   : > { %v854_v16 = vsel %vm852_vm5, %v849_v13, %v851_v15 }
 0x179   : > { %2245 = vmatprep.subr.msk.bf16.mxu1 %vm574_vm1, %v854_v16 }
 0x17a   : > { %874 = vmatpush1.bf16.msra.mxu1 %v868_v17  ;;  %v1620_v19 = vpop.permute.xlu1 %1619 }
 0x17d   : > { %2246 = vmatmul.mubr.msk.bf16.vlgmr.msra.gmra.mrb[0].mxu1 %vm561_vm3, %v2548_v18 }
 0x17e   : > { %915 = vmatprep.mubr.bf16.mxu1 %v2596_v39 }
 0x17f   : > { %v1624_v20 = vpop.permute.xlu1 %1623 }
 0x180   : > { %v1622_v21 = vpop.permute.xlu0 %1621 }
 0x181   : > { %v1625_v22 = vsel %vm512_vm0, %v1620_v19, %v1622_v21  ;;  %v1626_v24 = vsel %vm512_vm0, %v1622_v21, %v1624_v20 }
 0x182   : > { %v1640_v28 = vsel %vm574_vm1, %v1625_v22, 0  ;;  %2330 = vmatprep.subr.msk.bf16.mxu0 %vm574_vm1, %v1626_v24 }
 0x183   : > { %1646 = vmatpush1.bf16.msra.mxu0 %v1640_v28 }
 0x185   : > { %2247 = vmatmul.mubr.msk.bf16.gmra.mrb[4].mxu1 %vm561_vm3, %v2550_v27 }
 0x186   : > { %2331 = vmatmul.mubr.msk.bf16.vlgmr.msra.gmra.mrb[0].mxu0 %vm561_vm3, %v2551_v30  ;;  %925 = vmatprep.mubr.bf16.mxu1 %v2596_v39 }
 0x187   : > { %1687 = vmatprep.mubr.bf16.mxu0 %v2596_v39  ;;  %v1007_v31 = vpop.permute.xlu0 %1006 }
 0x188   : > { %v1009_v33 = vpop.permute.xlu1 %1008 }
 0x189   : > { %v1013_v35 = vsel %vm1012_vm2, %v1007_v31, %v1009_v33 }
 0x18a   : > { %v1028_v38 = vsel %vm574_vm1, %v1013_v35, 0 }
 0x18b   : > { %v1011_v37 = vpop.permute.xlu0 %1010 }
 0x18c   : > { %v1014_v40 = vsel %vm1012_vm2, %v1009_v33, %v1011_v37 }
 0x18d   : > { %2248 = vmatmul.mubr.msk.bf16.gmra.mrb[8].mxu1 %vm561_vm3, %v2552_v34  ;;  %2262 = vmatprep.subr.msk.bf16.mxu1 %vm574_vm1, %v1014_v40 }
 0x18e   : > { %2332 = vmatmul.mubr.msk.bf16.gmra.mrb[4].mxu0 %vm561_vm3, %v2553_v36  ;;  %935 = vmatprep.mubr.bf16.mxu1 %v2596_v39  ;;  %v1778_v41 = vpop.permute.xlu1 %1777 }
 0x18f   : > { %1697 = vmatprep.mubr.bf16.mxu0 %v2596_v39  ;;  %1034 = vmatpush1.bf16.msra.mxu1 %v1028_v38 }
 0x190   : > { %2359 = vmatprep.subr.msk.bf16.mxu1 %vm574_vm1, %v2715_v29 }
 0x193   : > { %v1782_v44 = vpop.permute.xlu1 %1781 }
 0x194   : > { %v1780_v45 = vpop.permute.xlu0 %1779 }
 0x195   : > { %2249 = vmatmul.mubr.msk.bf16.gmra.mrb[12].mxu1 %vm561_vm3, %v2554_v23  ;;  %v1783_v46 = vsel %vm476_vm4, %v1778_v41, %v1780_v45  ;;  %v1784_v47 = vsel %vm476_vm4, %v1780_v45, %v1782_v44 }
 0x196   : > { %2333 = vmatmul.mubr.msk.bf16.gmra.mrb[8].mxu0 %vm561_vm3, %v2555_v43  ;;  %1065 = vmatprep.mubr.bf16.mxu1 %v2596_v39  ;;  %v1798_v29 = vsel %vm574_vm1, %v1783_v46, 0 }
 0x197   : > { %1707 = vmatprep.mubr.bf16.mxu0 %v2596_v39  ;;  %2347 = vmatprep.subr.msk.bf16.mxu0 %vm574_vm1, %v1784_v47 }
 0x198   : > { %1804 = vmatpush1.bf16.msra.mxu0 %v1798_v29 }
 0x19d   : > { %2263 = vmatmul.mubr.msk.bf16.vlgmr.msra.gmra.mrb[0].mxu1 %vm561_vm3, %v2556_v48 }
 0x19e   : > { %2334 = vmatmul.mubr.msk.bf16.gmra.mrb[12].mxu0 %vm561_vm3, %v2557_v49  ;;  %1075 = vmatprep.mubr.bf16.mxu1 %v2596_v39 }
 0x19f   : > { %1835 = vmatprep.mubr.bf16.mxu0 %v2596_v39  ;;  %2360 = vmatpush1.bf16.msra.mxu1 %v2723_v32  ;;  %v2560_v32 = vld [vmem:[%s3105_s4 + $0x70] sm:$0xff]  }
 0x1a4   : > { %v1908_v55 = vpop.permute.xlu1 %1907 }
 0x1a5   : > { %2264 = vmatmul.mubr.msk.bf16.gmra.mrb[4].mxu1 %vm561_vm3, %v2558_v50  ;;  %v1903_v56 = vpop.permute.xlu0 %1902 }
 0x1a6   : > { %2348 = vmatmul.mubr.msk.bf16.vlgmr.msra.gmra.mrb[0].mxu0 %vm561_vm3, %v2559_v25  ;;  %1085 = vmatprep.mubr.bf16.mxu1 %v2596_v39 }
 0x1a7   : > { %1845 = vmatprep.mubr.bf16.mxu0 %v2596_v39 }
 0x1a8   : > { %v1913_v57 = vpop.permute.xlu1 %1912 }
 0x1a9   : > { %v1918_v58 = vpop.permute.xlu0 %1917 }
 0x1ac   : > { %v3054_v61 = vpop.permute.xlu1 %1922 }
 0x1ad   : > { %2265 = vmatmul.mubr.msk.bf16.gmra.mrb[8].mxu1 %vm561_vm3, %v2560_v32  ;;  %v3056_v63 = vpop.permute.xlu0 %1927 }
 0x1ae   : > { %2349 = vmatmul.mubr.msk.bf16.gmra.mrb[4].mxu0 %vm561_vm3, %v2561_v51  ;;  %1095 = vmatprep.mubr.bf16.mxu1 %v2596_v39 }
 0x1af   : > { %1855 = vmatprep.mubr.bf16.mxu0 %v2596_v39 }
 0x1b1   : > { %v3060_v2 = vpop.permute.xlu0 %1937 }
 0x1b5   : > { %2266 = vmatmul.mubr.msk.bf16.gmra.mrb[12].mxu1 %vm561_vm3, %v2562_v52  ;;  %v1972_v21 = vpop.permute.xlu0 %1971 }
 0x1b6   : > { %2350 = vmatmul.mubr.msk.bf16.gmra.mrb[8].mxu0 %vm561_vm3, %v2563_v53  ;;  %1223 = vmatprep.mubr.bf16.mxu1 %v2596_v39 }
 0x1b7   : > { %1865 = vmatprep.mubr.bf16.mxu0 %v2596_v39 }
 0x1b9   : > { %v1982_v48 = vpop.permute.xlu0 %1981 }
 0x1bd   : > { %2282 = vmatmul.mubr.msk.bf16.vlgmr.msra.gmra.mrb[8].mxu1 %vm561_vm3, %v2564_v54 }
 0x1be   : > { %2351 = vmatmul.mubr.msk.bf16.gmra.mrb[12].mxu0 %vm561_vm3, %v2565_v42  ;;  %1233 = vmatprep.mubr.bf16.mxu1 %v2596_v39  ;;  %v3058_v39 = vpop.permute.xlu1 %1932 }
 0x1c2   : > { %v1967_v16 = vpop.permute.xlu1 %1966 }
 0x1c5   : > { %2283 = vmatmul.mubr.msk.bf16.gmra.mrb[12].mxu1 %vm561_vm3, %v2566_v26 }
 0x1c6   : > { %v1977_v44 = vpop.permute.xlu1 %1976 }
 0x270   : > { %v1067_v59 = vpop.f32.mrb[0].mxu1 }
 0x271   : > { %v1069_v60 = vpop.f32.mrb[1].mxu1 }
 0x272   : > { %v1071_v62 = vpop.f32.mrb[2].mxu1 }
 0x273   : > { %v1073_v0 = vpop.f32.mrb[3].mxu1 }
 0x278   : > { %v1077_v1 = vpop.f32.mrb[4].mxu1 }
 0x279   : > { %v1079_v3 = vpop.f32.mrb[5].mxu1  ;;  %v1837_v4 = vpop.f32.mrb[0].mxu0 }
 0x27a   : > { %v2361_v5 = vadd.f32 %v1837_v4, %v1067_v59  ;;  %v1081_v6 = vpop.f32.mrb[6].mxu1  ;;  %v1839_v7 = vpop.f32.mrb[1].mxu0 }
 0x27b   : > { %v2362_v8 = vadd.f32 %v1839_v7, %v1069_v60  ;;  %v1083_v9 = vpop.f32.mrb[7].mxu1  ;;  %v1841_v10 = vpop.f32.mrb[2].mxu0 }
 0x27c   : > { %v1940_v11 = vmul.f32 %v2361_v5, %v1903_v56  ;;  %v2363_v12 = vadd.f32 %v1841_v10, %v1071_v62  ;;  %v1843_v13 = vpop.f32.mrb[3].mxu0  ;;  %v1987_v7 = vpop.permute.xlu1 %1986 }
 0x27d   : > { %v1941_v14 = vmul.f32 %v2362_v8, %v1903_v56  ;;  %v2364_v15 = vadd.f32 %v1843_v13, %v1073_v0  ;;  %v1992_v13 = vpop.permute.xlu0 %1991 }
 0x27e   : > { %v1942_v17 = vmul.f32 %v2363_v12, %v1908_v55  ;;  %v2004_v18 = vadd.f32 %v1967_v16, %v1940_v11 }
 0x27f   : > { %v1943_v19 = vmul.f32 %v2364_v15, %v1908_v55  ;;  %v2005_v20 = vadd.f32 %v1967_v16, %v1941_v14 }
 0x280   : > { %v2020_v22 = vmax.f32 %v2004_v18, 0.0  ;;  %v2006_v24 = vadd.f32 %v1972_v21, %v1942_v17 }
 0x281   : > { %v2021_v27 = vmax.f32 %v2005_v20, 0.0  ;;  %v2007_v28 = vadd.f32 %v1972_v21, %v1943_v19  ;;  %v1847_v30 = vpop.f32.mrb[4].mxu0 }
 0x282   : > { %2036 = vst [vmem:[%s3066_s29] sm:$0xff] %v2020_v22  ;;  %v2022_v31 = vmax.f32 %v2006_v24, 0.0  ;;  %v2365_v33 = vadd.f32 %v1847_v30, %v1077_v1  ;;  %v1849_v34 = vpop.f32.mrb[5].mxu0 }
 0x283   : > { %2037 = vst [vmem:[%s3066_s29 + $0x8] sm:$0xff] %v2021_v27  ;;  %v2023_v35 = vmax.f32 %v2007_v28, 0.0  ;;  %v2366_v36 = vadd.f32 %v1849_v34, %v1079_v3  ;;  %v1851_v37 = vpop.f32.mrb[6].mxu0 }
 0x284   : > { %2038 = vst [vmem:[%s3066_s29 + $0x10] sm:$0xff] %v2022_v31  ;;  %v1944_v38 = vmul.f32 %v2365_v33, %v1913_v57  ;;  %v2367_v40 = vadd.f32 %v1851_v37, %v1081_v6  ;;  %v1853_v41 = vpop.f32.mrb[7].mxu0  ;;  %v1997_v31 = vpop.permute.xlu1 %1996 }
 0x285   : > { %2039 = vst [vmem:[%s3066_s29 + $0x18] sm:$0xff] %v2023_v35  ;;  %v1945_v23 = vmul.f32 %v2366_v36, %v1913_v57  ;;  %v2368_v43 = vadd.f32 %v1853_v41, %v1083_v9 }
 0x286   : > { %v1946_v45 = vmul.f32 %v2367_v40, %v1918_v58  ;;  %v2008_v46 = vadd.f32 %v1977_v44, %v1944_v38  ;;  %v2002_v38 = vpop.permute.xlu0 %2001 }
 0x287   : > { %v1947_v47 = vmul.f32 %v2368_v43, %v1918_v58  ;;  %v2009_v29 = vadd.f32 %v1977_v44, %v1945_v23 }
 0x288   : > { %v2024_v49 = vmax.f32 %v2008_v46, 0.0  ;;  %v2010_v50 = vadd.f32 %v1982_v48, %v1946_v45 }
 0x289   : > { %v2025_v25 = vmax.f32 %v2009_v29, 0.0  ;;  %v2011_v32 = vadd.f32 %v1982_v48, %v1947_v47  ;;  %v1857_v51 = vpop.f32.mrb[8].mxu0 }
 0x28a   : > { %2040 = vst [vmem:[%s3066_s29 + $0x20] sm:$0xff] %v2024_v49  ;;  %v2026_v52 = vmax.f32 %v2010_v50, 0.0  ;;  %v1859_v53 = vpop.f32.mrb[9].mxu0 }
 0x28b   : > { %2041 = vst [vmem:[%s3066_s29 + $0x28] sm:$0xff] %v2025_v25  ;;  %v2027_v54 = vmax.f32 %v2011_v32, 0.0  ;;  %v1861_v42 = vpop.f32.mrb[10].mxu0 }
 0x28c   : > { %2042 = vst [vmem:[%s3066_s29 + $0x30] sm:$0xff] %v2026_v52  ;;  %v1863_v26 = vpop.f32.mrb[11].mxu0 }
 0x28d   : > { %2043 = vst [vmem:[%s3066_s29 + $0x38] sm:$0xff] %v2027_v54 }
 0x290   : > { %v1225_v55 = vpop.f32.mrb[8].mxu1 }
 0x291   : > { %v2369_v56 = vadd.f32 %v1857_v51, %v1225_v55  ;;  %v1227_v57 = vpop.f32.mrb[9].mxu1  ;;  %v1867_v58 = vpop.f32.mrb[12].mxu0 }
 0x292   : > { %v2370_v59 = vadd.f32 %v1859_v53, %v1227_v57  ;;  %v1229_v60 = vpop.f32.mrb[10].mxu1  ;;  %v1869_v62 = vpop.f32.mrb[13].mxu0 }
 0x293   : > { %v1948_v0 = vmul.f32 %v2369_v56, %v3054_v61  ;;  %v2371_v1 = vadd.f32 %v1861_v42, %v1229_v60  ;;  %v1231_v3 = vpop.f32.mrb[11].mxu1  ;;  %v1871_v4 = vpop.f32.mrb[14].mxu0 }
 0x294   : > { %v1949_v5 = vmul.f32 %v2370_v59, %v3054_v61  ;;  %v2372_v6 = vadd.f32 %v1863_v26, %v1231_v3  ;;  %v1873_v8 = vpop.f32.mrb[15].mxu0 }
 0x295   : > { %v1950_v9 = vmul.f32 %v2371_v1, %v3056_v63  ;;  %v2012_v10 = vadd.f32 %v1987_v7, %v1948_v0 }
 0x296   : > { %v1951_v11 = vmul.f32 %v2372_v6, %v3056_v63  ;;  %v2013_v12 = vadd.f32 %v1987_v7, %v1949_v5 }
 0x297   : > { %v2028_v14 = vmax.f32 %v2012_v10, 0.0  ;;  %v2014_v15 = vadd.f32 %v1992_v13, %v1950_v9 }
 0x298   : > { %v2029_v16 = vmax.f32 %v2013_v12, 0.0  ;;  %v2015_v17 = vadd.f32 %v1992_v13, %v1951_v11  ;;  %v1235_v18 = vpop.f32.mrb[12].mxu1 }
 0x299   : > { %2044 = vst [vmem:[%s3066_s29 + $0x40] sm:$0xff] %v2028_v14  ;;  %v2030_v61 = vmax.f32 %v2014_v15, 0.0  ;;  %v2373_v19 = vadd.f32 %v1867_v58, %v1235_v18  ;;  %v1237_v20 = vpop.f32.mrb[13].mxu1 }
 0x29a   : > { %2045 = vst [vmem:[%s3066_s29 + $0x48] sm:$0xff] %v2029_v16  ;;  %v2031_v21 = vmax.f32 %v2015_v17, 0.0  ;;  %v2374_v22 = vadd.f32 %v1869_v62, %v1237_v20  ;;  %v1239_v24 = vpop.f32.mrb[14].mxu1 }
 0x29b   : > { %2046 = vst [vmem:[%s3066_s29 + $0x50] sm:$0xff] %v2030_v61  ;;  %v2375_v27 = vadd.f32 %v1871_v4, %v1239_v24  ;;  %v1241_v63 = vpop.f32.mrb[15].mxu1  ;;  %v1952_v28 = vmul.f32 %v2373_v19, %v3058_v39 }
 0x29c   : > { %2047 = vst [vmem:[%s3066_s29 + $0x58] sm:$0xff] %v2031_v21  ;;  %v2376_v30 = vadd.f32 %v1873_v8, %v1241_v63  ;;  %v1953_v33 = vmul.f32 %v2374_v22, %v3058_v39 }
 0x29d   : > { %v2016_v34 = vadd.f32 %v1997_v31, %v1952_v28  ;;  %v1954_v35 = vmul.f32 %v2375_v27, %v3060_v2 }
 0x29e   : > { %v2017_v36 = vadd.f32 %v1997_v31, %v1953_v33  ;;  %v1955_v37 = vmul.f32 %v2376_v30, %v3060_v2 }
 0x29f   : > { %v2032_v40 = vmax.f32 %v2016_v34, 0.0  ;;  %v2018_v41 = vadd.f32 %v2002_v38, %v1954_v35 }
 0x2a0   : > { %v2033_v23 = vmax.f32 %v2017_v36, 0.0  ;;  %v2019_v43 = vadd.f32 %v2002_v38, %v1955_v37 }
 0x2a1   : > { %2048 = vst [vmem:[%s3066_s29 + $0x60] sm:$0xff] %v2032_v40  ;;  %v2034_v44 = vmax.f32 %v2018_v41, 0.0 }
 0x2a2   : > { %2049 = vst [vmem:[%s3066_s29 + $0x68] sm:$0xff] %v2033_v23  ;;  %v2035_v45 = vmax.f32 %v2019_v43, 0.0 }
 0x2a3   : > { %2050 = vst [vmem:[%s3066_s29 + $0x70] sm:$0xff] %v2034_v44 }
 0x2a4   : > { %2051 = vst [vmem:[%s3066_s29 + $0x78] sm:$0xff] %v2035_v45 }
 0x2a5 PF: > { %s17_s26 = sadd.s32 1, %s2589_s26   ;;  %s3109_s24 = smov %s2585_s25 }
 0x2a6   : > { %p14_p5 = scmp.ge.s32.totalorder %s17_s26, 4   ;;  %s3110_s25 = smov %s3112_s27 }
 0x2a8   :  { %16 = sbr.rel (!%p14_p5) target bundleno = 2 (0x2), region = 95 }

// kernel: resnet_start_single.2
= control target key start
LH: loop header
LB: loop body
LE: loop exit
PB: predicated region body
PF: predicated region fallthrough
CT: control target
= control target key end

     0   :  { %s2603_s21 = smov 0   ;;  %s2605_s22 = smov 0   ;;  %s3067_s0 = inlined_call_operand.vmem [shape: bf16[3,256], index: 0, kind: input, shape index: {}]   ;;  %s3068_s1 = inlined_call_operand.vmem [shape: bf16[2,8,768], index: 1, kind: input, shape index: {}, may-alias: {1,2,3}]   ;;  %s3069_s2 = inlined_call_operand.vmem [shape: bf16[2,8,768], index: 2, kind: input, shape index: {}, may-alias: {1,2,3}]   ;;  %s3070_s3 = inlined_call_operand.vmem [shape: bf16[2,8,768], index: 3, kind: input, shape index: {}, may-alias: {1,2,3}]   ;;  %s3071_s4 = inlined_call_operand.vmem [shape: bf16[9,64,8], index: 4, kind: input, shape index: {}]   ;;  %s3072_s5 = inlined_call_operand.vmem [shape: f32[2,64,1], index: 5, kind: output, shape index: {0}]   ;;  %s3073_s6 = inlined_call_operand.vmem [shape: f32[2,64,1], index: 6, kind: output, shape index: {1}]  }
   0x1   :  { %s2607_s23 = smov 0  }
   0x2 LB: > { %s29_s24 = sadd.s32 1, %s2552_s22  ;;  %p2160_p0 = scmp.ge.s32.totalorder %s2556_s23, 1  ;;  %s2556_s23 = sphi %s2607_s23, %s17_s23   ;;  %s2552_s22 = sphi %s2605_s22, %s3075_s22   ;;  %s2548_s21 = sphi %s2603_s21, %s3074_s21  }
   0x3   : > { %p31_p1 = scmp.ge.s32.totalorder %s29_s24, 2  ;;  %p287_p2 = scmp.lt.s32.totalorder %s2556_s23, 3 }
   0x5   : > { %s3077_s24 = smov (%p31_p1, %s29_s24), 0  ;;  %p288_p3 = pnand %p2160_p0, %p287_p2 }
   0x6   : > { %v2172_v0 = vld.sshfl [vmem:[%s3067_s0] sm:$0x11 pattern:$0x76325410] (!%p288_p3)  ;;  %v455_v1 = vlaneseq (!%p288_p3)  ;;  %p358_p4 = scmp.lt.s32.totalorder (!%p288_p3), %s2548_s21, 1  ;;  %s2558_s30 = smov (!%p288_p3), 112  }
   0x7   : > { %291 = sbr.rel (%p288_p3) target bundleno = 821 (0x335), region = 40  ;;  %v488_v2 = vshrl.u32 (!%p288_p3), %v2172_v0, 16  ;;  %v451_v3 = vcombine.high (!%p288_p3), %v2172_v0, %v2172_v0  ;;  %v2199_v4 = vld.sshfl [vmem:[%s3067_s0] sm:$0x22 pattern:$0x76325410] (!%p288_p3)  ;;  %v453_v16 = vpack.i.b16 (!%p288_p3), %v2172_v0, %v2172_v0 }
   0x8   : > { %v456_v5 = vshrl.u32 (!%p288_p3), %v455_v1, 7  ;;  %v783_v6 = vpack.i.b16 (!%p288_p3), %v2199_v4, %v2199_v4  ;;  %v781_v7 = vcombine.high (!%p288_p3), %v2199_v4, %v2199_v4  ;;  %s2559_s7 = smov (!%p288_p3), 1   ;;  %s2560_s15 = smov (!%p288_p3), 111   ;;  %vm508_vm0 = vcmask (!%p288_p3), 916480   ;;  %v2498_v37 = vld [vmem:[%s3071_s4 + $0x80] sm:$0xff] (!%p288_p3)   ;;  %v2500_v52 = vld [vmem:[%s3071_s4 + $0x88] sm:$0xff] (!%p288_p3)  }
   0x9   : > { %v489_v8 = vpack.i.b16 (!%p288_p3), %v488_v2, %v488_v2  ;;  %v495_v9 = vshrl.u32 (!%p288_p3), %v451_v3, 16  ;;  %v460_v19 = vpack.i.b16 (!%p288_p3), %v451_v3, %v451_v3  ;;  %s2561_s16 = smov (!%p288_p3), 15   ;;  %s2562_s25 = smov (!%p288_p3), 16   ;;  %vm570_vm1 = vcmask (!%p288_p3), 1043456   ;;  %v2499_v63 = vld [vmem:[%s3071_s4 + $0x20] sm:$0xff] (!%p288_p3)  }
   0xa   : > { %v457_v10 = vsub.s32 (!%p288_p3), 0, %v456_v5  ;;  %v787_v11 = vsub.s32 (!%p288_p3), 1, %v456_v5  ;;  %v790_v12 = vpack.i.b16 (!%p288_p3), %v781_v7, %v781_v7  ;;  %vm406_vm2 = vcmask (!%p288_p3), 7168   ;;  %s2564_s28 = smov (!%p288_p3), 113   ;;  %s2566_s8 = smov (!%p288_p3), 17  }
   0xb   : > { %v496_v13 = vpack.i.b16 (!%p288_p3), %v495_v9, %v495_v9  ;;  %v2563_v39 = vmov (!%p288_p3), 0   ;;  %vm557_vm3 = vcmask (!%p288_p3), 64512   ;;  %vm472_vm4 = vcmask (!%p288_p3), 908288  }
   0xc   : > { %v2629_v14 = vrot.slane (!%p288_p3), %v489_v8, %v457_v10  ;;  %v2631_v15 = vrot.slane (!%p288_p3), %v783_v6, %v787_v11  ;;  %v2640_v18 = vrot.slane (!%p288_p3), %v790_v12, %v787_v11  ;;  %v2654_v20 = vrot.slane (!%p288_p3), %v453_v16, %v457_v10  ;;  %1199 = vmatprep.mubr.bf16.mxu0 (!%p288_p3), %v2563_v39 }
   0xd   : > { %v2636_v17 = vrot.slane (!%p288_p3), %v496_v13, %v457_v10  ;;  %v2656_v21 = vrot.slane (!%p288_p3), %v460_v19, %v457_v10  ;;  %609 = vmatprep.mubr.bf16.mxu1 (!%p288_p3), %v2563_v39  ;;  %vm848_vm5 = vcmask (!%p288_p3), 121856   ;;  %vm554_vm6 = vcmask (!%p288_p3), 130048   ;;  %v2502_v10 = vld [vmem:[%s3071_s4 + $0x28] sm:$0xff] (!%p288_p3)  }
   0xe   : > { %s3079_s21 = smov (!%p358_p4, %s2548_s21), 1  ;;  %504 = vrot.lane.b32.xlu0 %v2629_v14, %s2558_s30  ;;  %1256 = vrot.lane.b32.xlu1 %v2631_v15, %s2559_s7  ;;  %vm802_vm7 = vcmask 924672   ;;  %vm962_vm8 = vcmask 1039360   ;;  %vm679_vm9 = vcmask 138240  }
   0xf   : > { %s2457_s29 = smul.u32 24, %s3079_s21 }
  0x11   : > { %s365_s10 = scalar_lea.vmem %s3068_s1, %s2457_s29  ;;  %s2324_s11 = sadd.s32 16, %s2457_s29 }
  0x12   : > { %s2648_s14 = scalar_lea.vmem %s3070_s3, %s2324_s11  ;;  %506 = vrot.lane.b32.xlu0 %v2636_v17, %s2558_s30  ;;  %1258 = vrot.lane.b32.xlu1 %v2640_v18, %s2559_s7  ;;  %s2322_s17 = sadd.s32 8, %s2457_s29  ;;  %v2669_v23 = vld [vmem:[%s365_s10 + $0x4] ss:$0 sps:$4 sm:$0xff]  }
  0x13   : > { %s376_s20 = scalar_lea.vmem %s3069_s2, %s2322_s17  ;;  %v2709_v42 = vld [vmem:[%s2648_s14] ss:$0 sps:$4 sm:$0xff]   ;;  %s2565_s29 = smov 127  }
  0x14   : > { %v424_v22 = vld [vmem:[%s376_s20] sm:$0xff]  ;;  %s2325_s20 = sshll.u32 %s3079_s21, 6 }
  0x15   : > { %v2671_v25 = vcombine.low %v424_v22, %v424_v22  ;;  %v2673_v26 = vcombine.high %v424_v22, %v424_v22  ;;  %s2971_s26 = scalar_lea.vmem %s3072_s5, %s2325_s20 }
  0x16   : > { %468 = vrot.lane.b32.xlu0 %v2654_v20, %s2560_s15  ;;  %470 = vrot.lane.b32.xlu1 %v2656_v21, %s2560_s15 }
  0x17   : > { %v2678_v29 = vmul.bf16 %v2673_v26, %v2636_v17  ;;  %v1118_v30 = vmul.bf16 %v2671_v25, %v2629_v14 }
  0x19   : > { %2246 = vmatprep.subr.msk.bf16.mxu0 %vm570_vm1, %v2678_v29  ;;  %v2686_v32 = vsel %vm570_vm1, %v1118_v30, 0 }
  0x1a   : > { %1414 = vrot.lane.b32.xlu0 %v2654_v20, %s2561_s16  ;;  %1416 = vrot.lane.b32.xlu1 %v2656_v21, %s2561_s16 }
  0x1b   : > { %1168 = vmatpush1.bf16.msra.mxu0 %v2686_v32 }
  0x1e   : > { %2247 = vmatmul.mubr.msk.bf16.vlgmr.msra.gmra.mrb[0].mxu0 %vm557_vm3, %v2498_v37 }
  0x1f   : > { %1209 = vmatprep.mubr.bf16.mxu0 %v2563_v39 }
  0x26   : > { %2248 = vmatmul.mubr.msk.bf16.gmra.mrb[4].mxu0 %vm557_vm3, %v2500_v52 }
  0x27   : > { %1357 = vmatprep.mubr.bf16.mxu0 %v2563_v39 }
  0x80   : > { %v505_v24 = vpop.permute.xlu0 %504  ;;  %v1257_v27 = vpop.permute.xlu1 %1256 }
  0x81   : > { %v513_v28 = vmul.bf16 %v2669_v23, %v505_v24  ;;  %v1264_v41 = vmul.bf16 %v2671_v25, %v1257_v27 }
  0x83   : > { %548 = vrot.lane.b32.xlu0 %v513_v28, %s2562_s25 }
  0x84   : > { %v507_v31 = vpop.permute.xlu0 %506  ;;  %v1259_v35 = vpop.permute.xlu1 %1258 }
  0x85   : > { %v509_v33 = vsel %vm508_vm0, %v505_v24, %v507_v31  ;;  %v515_v34 = vmul.bf16 %v2673_v26, %v507_v31  ;;  %v1260_v38 = vsel %vm406_vm2, %v1257_v27, %v1259_v35  ;;  %v1266_v43 = vmul.bf16 %v2709_v42, %v1259_v35  ;;  %v2503_v24 = vld [vmem:[%s3071_s4 + $0x30] sm:$0xff]   ;;  %v2504_v31 = vld [vmem:[%s3071_s4 + $0xa8] sm:$0xff]  }
  0x86   : > { %v514_v36 = vmul.bf16 %v2671_v25, %v509_v33  ;;  %v1265_v40 = vmul.bf16 %v2673_v26, %v1260_v38 }
  0x87   : > { %552 = vrot.lane.b32.xlu0 %v515_v34, %s2562_s25 }
  0x88   : > { %550 = vrot.lane.b32.xlu1 %v514_v36, %s2562_s25  ;;  %v469_v44 = vpop.permute.xlu0 %468  ;;  %v471_v45 = vpop.permute.xlu1 %470 }
  0x89   : > { %v477_v46 = vmul.bf16 %v2669_v23, %v469_v44  ;;  %v473_v47 = vsel %vm472_vm4, %v469_v44, %v471_v45  ;;  %v479_v48 = vmul.bf16 %v2673_v26, %v471_v45 }
  0x8a   : > { %v478_v49 = vmul.bf16 %v2671_v25, %v473_v47 }
  0x8b   : > { %800 = vrot.lane.b32.xlu0 %v2640_v18, %s2564_s28 }
  0x8c   : > { %798 = vrot.lane.b32.xlu1 %v2631_v15, %s2564_s28  ;;  %v1415_v50 = vpop.permute.xlu0 %1414  ;;  %v1417_v51 = vpop.permute.xlu1 %1416 }
  0x8d   : > { %v1418_v53 = vsel %vm848_vm5, %v1415_v50, %v1417_v51  ;;  %v1422_v55 = vmul.bf16 %v2671_v25, %v1415_v50  ;;  %v1424_v56 = vmul.bf16 %v2709_v42, %v1417_v51 }
  0x8e   : > { %v1423_v54 = vmul.bf16 %v2673_v26, %v1418_v53 }
  0x8f   : > { %1301 = vrot.lane.b32.xlu0 %v1265_v40, %s2565_s29 }
  0x90   : > { %1299 = vrot.lane.b32.xlu1 %v1264_v41, %s2565_s29 }
  0x93   : > { %1572 = vrot.lane.b32.xlu0 %v2629_v14, %s2562_s25 }
  0x94   : > { %1303 = vrot.lane.b32.xlu1 %v1266_v43, %s2565_s29 }
  0x97   : > { %673 = vrot.lane.b32.xlu0 %v477_v46, %s2566_s8 }
  0x98   : > { %1574 = vrot.lane.b32.xlu1 %v2636_v17, %s2562_s25 }
  0x9b   : > { %677 = vrot.lane.b32.xlu0 %v479_v48, %s2566_s8  ;;  %v2506_v48 = vld [vmem:[%s3071_s4 + $0xb0] sm:$0xff]  }
  0x9c   : > { %675 = vrot.lane.b32.xlu1 %v478_v49, %s2566_s8 }
  0x9f   : > { %960 = vrot.lane.b32.xlu0 %v2656_v21, %s2565_s29 }
  0xa0   : > { %958 = vrot.lane.b32.xlu1 %v2654_v20, %s2565_s29 }
  0xa3   : > { %1459 = vrot.lane.b32.xlu0 %v1423_v54, %s2564_s28  ;;  %v2508_v54 = vld [vmem:[%s3071_s4 + $0xb8] sm:$0xff]  }
  0xa4   : > { %1457 = vrot.lane.b32.xlu1 %v1422_v55, %s2564_s28  ;;  %v2511_v55 = vld [vmem:[%s3071_s4 + $0x10] sm:$0xff]  }
  0xa7   : > { %1730 = vrot.lane.b32.xlu0 %v2631_v15, %s2566_s8  ;;  %v2501_v15 = vld [vmem:[%s3071_s4 + $0xa0] sm:$0xff]  }
  0xa8   : > { %1461 = vrot.lane.b32.xlu1 %v1424_v56, %s2564_s28  ;;  %v2512_v56 = vld [vmem:[%s3071_s4 + $0xc8] sm:$0xff]  }
  0xac   : > { %1732 = vrot.lane.b32.xlu1 %v2640_v18, %s2566_s8 }
  0xf5   : > { %v549_v57 = vpop.permute.xlu0 %548 }
  0xf9   : > { %v553_v58 = vpop.permute.xlu0 %552 }
  0xfa   : > { %v551_v59 = vpop.permute.xlu1 %550 }
  0xfb   : > { %v556_v60 = vsel %vm554_vm6, %v551_v59, %v553_v58  ;;  %v555_v61 = vsel %vm554_vm6, %v549_v57, %v551_v59  ;;  %v2513_v57 = vld [vmem:[%s3071_s4 + $0x18] sm:$0xff]   ;;  %v2514_v58 = vld [vmem:[%s3071_s4 + $0xd0] sm:$0xff]  }
  0xfc   : > { %2185 = vmatprep.subr.msk.bf16.mxu1 %vm570_vm1, %v556_v60  ;;  %v572_v62 = vsel %vm570_vm1, %v555_v61, 0  ;;  %v2516_v59 = vld [vmem:[%s3071_s4 + $0xd8] sm:$0xff]  }
  0xfd   : > { %578 = vmatpush1.bf16.msra.mxu1 %v572_v62  ;;  %v801_v0 = vpop.permute.xlu0 %800 }
  0xfe   : > { %v799_v1 = vpop.permute.xlu1 %798  ;;  %v809_v5 = vmul.bf16 %v2673_v26, %v801_v0 }
  0xff   : > { %v807_v2 = vmul.bf16 %v2669_v23, %v799_v1  ;;  %v803_v3 = vsel %vm802_vm7, %v799_v1, %v801_v0 }
 0x100   : > { %v808_v4 = vmul.bf16 %v2671_v25, %v803_v3  ;;  %2186 = vmatmul.mubr.msk.bf16.vlgmr.msra.gmra.mrb[0].mxu1 %vm557_vm3, %v2499_v63 }
 0x101   : > { %842 = vrot.lane.b32.xlu0 %v807_v2, %s2561_s16  ;;  %v1302_v6 = vpop.permute.xlu0 %1301  ;;  %619 = vmatprep.mubr.bf16.mxu1 %v2563_v39  ;;  %v2515_v2 = vld [vmem:[%s3071_s4 + $0x40] sm:$0xff]  }
 0x102   : > { %v1300_v7 = vpop.permute.xlu1 %1299  ;;  %844 = vrot.lane.b32.xlu1 %v808_v4, %s2561_s16 }
 0x103   : > { %v1305_v8 = vsel %vm962_vm8, %v1300_v7, %v1302_v6 }
 0x104   : > { %v1320_v14 = vsel %vm570_vm1, %v1305_v8, 0  ;;  %v2517_v8 = vld [vmem:[%s3071_s4 + $0x48] sm:$0xff]  }
 0x105   : > { %846 = vrot.lane.b32.xlu0 %v809_v5, %s2561_s16  ;;  %v1573_v9 = vpop.permute.xlu0 %1572 }
 0x106   : > { %v1304_v11 = vpop.permute.xlu1 %1303  ;;  %v1580_v12 = vmul.bf16 %v2671_v25, %v1573_v9 }
 0x107   : > { %v1306_v13 = vsel %vm962_vm8, %v1302_v6, %v1304_v11 }
 0x108   : > { %2263 = vmatprep.subr.msk.bf16.mxu0 %vm570_vm1, %v1306_v13  ;;  %1615 = vrot.lane.b32.xlu1 %v1580_v12, %s2558_s30  ;;  %v2519_v13 = vld [vmem:[%s3071_s4 + $0x50] sm:$0xff]  }
 0x109   : > { %1326 = vmatpush1.bf16.msra.mxu0 %v1320_v14  ;;  %v674_v16 = vpop.permute.xlu0 %673  ;;  %2187 = vmatmul.mubr.msk.bf16.gmra.mrb[4].mxu1 %vm557_vm3, %v2502_v10  ;;  %v2518_v10 = vld [vmem:[%s3071_s4 + $0xe0] sm:$0xff]  }
 0x10a   : > { %v1575_v17 = vpop.permute.xlu1 %1574  ;;  %629 = vmatprep.mubr.bf16.mxu1 %v2563_v39 }
 0x10b   : > { %v1576_v18 = vsel %vm554_vm6, %v1573_v9, %v1575_v17  ;;  %v1582_v19 = vmul.bf16 %v2709_v42, %v1575_v17 }
 0x10c   : > { %v1581_v20 = vmul.bf16 %v2673_v26, %v1576_v18  ;;  %2264 = vmatmul.mubr.msk.bf16.vlgmr.msra.gmra.mrb[0].mxu0 %vm557_vm3, %v2501_v15  ;;  %v2520_v15 = vld [vmem:[%s3071_s4 + $0xe8] sm:$0xff]  }
 0x10d   : > { %1619 = vrot.lane.b32.xlu1 %v1582_v19, %s2558_s30  ;;  %v678_v21 = vpop.permute.xlu0 %677  ;;  %1367 = vmatprep.mubr.bf16.mxu0 %v2563_v39 }
 0x10e   : > { %1617 = vrot.lane.b32.xlu0 %v1581_v20, %s2558_s30  ;;  %v676_v22 = vpop.permute.xlu1 %675  ;;  %v2521_v20 = vld [vmem:[%s3071_s4 + $0x58] sm:$0xff]  }
 0x10f   : > { %v680_v27 = vsel %vm679_vm9, %v674_v16, %v676_v22  ;;  %v681_v28 = vsel %vm679_vm9, %v676_v22, %v678_v21  ;;  %v2522_v21 = vld [vmem:[%s3071_s4 + $0xf0] sm:$0xff]  }
 0x110   : > { %v695_v30 = vsel %vm570_vm1, %v680_v27, 0  ;;  %2194 = vmatprep.subr.msk.bf16.mxu1 %vm570_vm1, %v681_v28 }
 0x111   : > { %701 = vmatpush1.bf16.msra.mxu1 %v695_v30  ;;  %v961_v33 = vpop.permute.xlu0 %960  ;;  %v2523_v30 = vld [vmem:[%s3071_s4 + $0x60] sm:$0xff]  }
 0x112   : > { %v959_v34 = vpop.permute.xlu1 %958  ;;  %2188 = vmatmul.mubr.msk.bf16.gmra.mrb[8].mxu1 %vm557_vm3, %v2503_v24  ;;  %v969_v38 = vmul.bf16 %v2673_v26, %v961_v33 }
 0x113   : > { %v967_v35 = vmul.bf16 %v2669_v23, %v959_v34  ;;  %v963_v36 = vsel %vm962_vm8, %v959_v34, %v961_v33  ;;  %639 = vmatprep.mubr.bf16.mxu1 %v2563_v39  ;;  %v2505_v23 = vld [vmem:[%s3071_s4 + $0x38] sm:$0xff]   ;;  %v2525_v33 = vld [vmem:[%s3071_s4 + $0x68] sm:$0xff]   ;;  %v2526_v34 = vld [vmem:[%s3071_s4 + $0x100] sm:$0xff]  }
 0x114   : > { %v968_v37 = vmul.bf16 %v2671_v25, %v963_v36  ;;  %2265 = vmatmul.mubr.msk.bf16.gmra.mrb[4].mxu0 %vm557_vm3, %v2504_v31  ;;  %v2524_v31 = vld [vmem:[%s3071_s4 + $0xf8] sm:$0xff]  }
 0x115   : > { %1002 = vrot.lane.b32.xlu0 %v967_v35, %s2559_s7  ;;  %v1460_v40 = vpop.permute.xlu0 %1459  ;;  %1377 = vmatprep.mubr.bf16.mxu0 %v2563_v39  ;;  %v2528_v35 = vld [vmem:[%s3071_s4 + $0x108] sm:$0xff]   ;;  %v2529_v36 = vld [vmem:[%s3071_s4 + $0x78] sm:$0xff]  }
 0x116   : > { %1004 = vrot.lane.b32.xlu1 %v968_v37, %s2559_s7  ;;  %v1458_v41 = vpop.permute.xlu1 %1457  ;;  %v2530_v37 = vld [vmem:[%s3071_s4 + $0x110] sm:$0xff]  }
 0x117   : > { %v1463_v43 = vsel %vm802_vm7, %v1458_v41, %v1460_v40  ;;  %v2533_v41 = vld [vmem:[%s3071_s4 + $0x98] sm:$0xff]  }
 0x118   : > { %v1478_v45 = vsel %vm570_vm1, %v1463_v43, 0 }
 0x119   : > { %1006 = vrot.lane.b32.xlu0 %v969_v38, %s2559_s7  ;;  %v1731_v44 = vpop.permute.xlu0 %1730  ;;  %v2531_v38 = vld [vmem:[%s3071_s4 + $0x90] sm:$0xff]   ;;  %s2976_s7 = scalar_lea.vmem %s3073_s6, %s2325_s20 }
 0x11a   : > { %v1462_v46 = vpop.permute.xlu1 %1461  ;;  %v1738_v47 = vmul.bf16 %v2671_v25, %v1731_v44  ;;  %2189 = vmatmul.mubr.msk.bf16.gmra.mrb[12].mxu1 %vm557_vm3, %v2505_v23  ;;  %v2507_v25 = vld [vmem:[%s3071_s4] sm:$0xff]  }
 0x11b   : > { %v1464_v49 = vsel %vm802_vm7, %v1460_v40, %v1462_v46  ;;  %732 = vmatprep.mubr.bf16.mxu1 %v2563_v39  ;;  %v2532_v40 = vld [vmem:[%s3071_s4 + $0x118] sm:$0xff]  }
 0x11c   : > { %2280 = vmatprep.subr.msk.bf16.mxu0 %vm570_vm1, %v1464_v49  ;;  %1773 = vrot.lane.b32.xlu1 %v1738_v47, %s2560_s15 }
 0x11d   : > { %1484 = vmatpush1.bf16.msra.mxu0 %v1478_v45 }
 0x11e   : > { %v1733_v50 = vpop.permute.xlu1 %1732  ;;  %2266 = vmatmul.mubr.msk.bf16.gmra.mrb[8].mxu0 %vm557_vm3, %v2506_v48 }
 0x11f   : > { %v1734_v51 = vsel %vm679_vm9, %v1731_v44, %v1733_v50  ;;  %v1740_v52 = vmul.bf16 %v2709_v42, %v1733_v50  ;;  %1387 = vmatprep.mubr.bf16.mxu0 %v2563_v39  ;;  %v2509_v42 = vld [vmem:[%s3071_s4 + $0x8] sm:$0xff]  }
 0x120   : > { %v1739_v53 = vmul.bf16 %v2673_v26, %v1734_v51  ;;  %v2510_v26 = vld [vmem:[%s3071_s4 + $0xc0] sm:$0xff]  }
 0x121   : > { %1777 = vrot.lane.b32.xlu1 %v1740_v52, %s2560_s15 }
 0x122   : > { %1775 = vrot.lane.b32.xlu0 %v1739_v53, %s2560_s15  ;;  %2195 = vmatmul.mubr.msk.bf16.vlgmr.msra.gmra.mrb[0].mxu1 %vm557_vm3, %v2507_v25 }
 0x123   : > { %742 = vmatprep.mubr.bf16.mxu1 %v2563_v39 }
 0x126   : > { %2267 = vmatmul.mubr.msk.bf16.gmra.mrb[12].mxu0 %vm557_vm3, %v2508_v54 }
 0x127   : > { %1515 = vmatprep.mubr.bf16.mxu0 %v2563_v39 }
 0x12a   : > { %2196 = vmatmul.mubr.msk.bf16.gmra.mrb[4].mxu1 %vm557_vm3, %v2509_v42 }
 0x12b   : > { %752 = vmatprep.mubr.bf16.mxu1 %v2563_v39 }
 0x12e   : > { %2281 = vmatmul.mubr.msk.bf16.vlgmr.msra.gmra.mrb[0].mxu0 %vm557_vm3, %v2510_v26 }
 0x12f   : > { %1525 = vmatprep.mubr.bf16.mxu0 %v2563_v39 }
 0x132   : > { %2197 = vmatmul.mubr.msk.bf16.gmra.mrb[8].mxu1 %vm557_vm3, %v2511_v55 }
 0x133   : > { %762 = vmatprep.mubr.bf16.mxu1 %v2563_v39 }
 0x136   : > { %2282 = vmatmul.mubr.msk.bf16.gmra.mrb[4].mxu0 %vm557_vm3, %v2512_v56 }
 0x137   : > { %1535 = vmatprep.mubr.bf16.mxu0 %v2563_v39 }
 0x13a   : > { %2198 = vmatmul.mubr.msk.bf16.gmra.mrb[12].mxu1 %vm557_vm3, %v2513_v57 }
 0x13b   : > { %901 = vmatprep.mubr.bf16.mxu1 %v2563_v39 }
 0x13e   : > { %2283 = vmatmul.mubr.msk.bf16.gmra.mrb[8].mxu0 %vm557_vm3, %v2514_v58 }
 0x13f   : > { %1545 = vmatprep.mubr.bf16.mxu0 %v2563_v39 }
 0x146   : > { %2284 = vmatmul.mubr.msk.bf16.gmra.mrb[12].mxu0 %vm557_vm3, %v2516_v59 }
 0x147   : > { %1673 = vmatprep.mubr.bf16.mxu0 %v2563_v39 }
 0x173   : > { %v843_v60 = vpop.permute.xlu0 %842 }
 0x174   : > { %v845_v61 = vpop.permute.xlu1 %844 }
 0x175   : > { %v849_v62 = vsel %vm848_vm5, %v843_v60, %v845_v61 }
 0x176   : > { %v864_v1 = vsel %vm570_vm1, %v849_v62, 0 }
 0x177   : > { %v847_v63 = vpop.permute.xlu0 %846 }
 0x178   : > { %v850_v0 = vsel %vm848_vm5, %v845_v61, %v847_v63 }
 0x179   : > { %2212 = vmatprep.subr.msk.bf16.mxu1 %vm570_vm1, %v850_v0 }
 0x17a   : > { %870 = vmatpush1.bf16.msra.mxu1 %v864_v1  ;;  %v1616_v3 = vpop.permute.xlu1 %1615 }
 0x17d   : > { %2213 = vmatmul.mubr.msk.bf16.vlgmr.msra.gmra.mrb[0].mxu1 %vm557_vm3, %v2515_v2 }
 0x17e   : > { %911 = vmatprep.mubr.bf16.mxu1 %v2563_v39 }
 0x17f   : > { %v1620_v4 = vpop.permute.xlu1 %1619 }
 0x180   : > { %v1618_v5 = vpop.permute.xlu0 %1617 }
 0x181   : > { %v1621_v6 = vsel %vm508_vm0, %v1616_v3, %v1618_v5  ;;  %v1622_v7 = vsel %vm508_vm0, %v1618_v5, %v1620_v4 }
 0x182   : > { %v1636_v9 = vsel %vm570_vm1, %v1621_v6, 0  ;;  %2297 = vmatprep.subr.msk.bf16.mxu0 %vm570_vm1, %v1622_v7 }
 0x183   : > { %1642 = vmatpush1.bf16.msra.mxu0 %v1636_v9 }
 0x185   : > { %2214 = vmatmul.mubr.msk.bf16.gmra.mrb[4].mxu1 %vm557_vm3, %v2517_v8 }
 0x186   : > { %2298 = vmatmul.mubr.msk.bf16.vlgmr.msra.gmra.mrb[0].mxu0 %vm557_vm3, %v2518_v10  ;;  %921 = vmatprep.mubr.bf16.mxu1 %v2563_v39 }
 0x187   : > { %1683 = vmatprep.mubr.bf16.mxu0 %v2563_v39  ;;  %v1003_v11 = vpop.permute.xlu0 %1002 }
 0x188   : > { %v1005_v12 = vpop.permute.xlu1 %1004 }
 0x189   : > { %v1009_v14 = vsel %vm406_vm2, %v1003_v11, %v1005_v12 }
 0x18a   : > { %v1024_v17 = vsel %vm570_vm1, %v1009_v14, 0 }
 0x18b   : > { %v1007_v16 = vpop.permute.xlu0 %1006 }
 0x18c   : > { %v1010_v18 = vsel %vm406_vm2, %v1005_v12, %v1007_v16 }
 0x18d   : > { %2215 = vmatmul.mubr.msk.bf16.gmra.mrb[8].mxu1 %vm557_vm3, %v2519_v13  ;;  %2229 = vmatprep.subr.msk.bf16.mxu1 %vm570_vm1, %v1010_v18 }
 0x18e   : > { %2299 = vmatmul.mubr.msk.bf16.gmra.mrb[4].mxu0 %vm557_vm3, %v2520_v15  ;;  %931 = vmatprep.mubr.bf16.mxu1 %v2563_v39  ;;  %v1774_v19 = vpop.permute.xlu1 %1773 }
 0x18f   : > { %1693 = vmatprep.mubr.bf16.mxu0 %v2563_v39  ;;  %1030 = vmatpush1.bf16.msra.mxu1 %v1024_v17 }
 0x190   : > { %2327 = vmatprep.subr.msk.bf16.mxu1 %vm570_vm1, %v2678_v29 }
 0x193   : > { %v1778_v22 = vpop.permute.xlu1 %1777 }
 0x194   : > { %v1776_v24 = vpop.permute.xlu0 %1775 }
 0x195   : > { %2216 = vmatmul.mubr.msk.bf16.gmra.mrb[12].mxu1 %vm557_vm3, %v2521_v20  ;;  %v1779_v27 = vsel %vm472_vm4, %v1774_v19, %v1776_v24  ;;  %v1780_v28 = vsel %vm472_vm4, %v1776_v24, %v1778_v22 }
 0x196   : > { %2300 = vmatmul.mubr.msk.bf16.gmra.mrb[8].mxu0 %vm557_vm3, %v2522_v21  ;;  %1061 = vmatprep.mubr.bf16.mxu1 %v2563_v39  ;;  %v1794_v29 = vsel %vm570_vm1, %v1779_v27, 0 }
 0x197   : > { %1703 = vmatprep.mubr.bf16.mxu0 %v2563_v39  ;;  %2314 = vmatprep.subr.msk.bf16.mxu0 %vm570_vm1, %v1780_v28 }
 0x198   : > { %1800 = vmatpush1.bf16.msra.mxu0 %v1794_v29 }
 0x19d   : > { %2230 = vmatmul.mubr.msk.bf16.vlgmr.msra.gmra.mrb[0].mxu1 %vm557_vm3, %v2523_v30 }
 0x19e   : > { %2301 = vmatmul.mubr.msk.bf16.gmra.mrb[12].mxu0 %vm557_vm3, %v2524_v31  ;;  %1071 = vmatprep.mubr.bf16.mxu1 %v2563_v39 }
 0x19f   : > { %1831 = vmatprep.mubr.bf16.mxu0 %v2563_v39  ;;  %2328 = vmatpush1.bf16.msra.mxu1 %v2686_v32  ;;  %v2527_v32 = vld [vmem:[%s3071_s4 + $0x70] sm:$0xff]  }
 0x1a5   : > { %2231 = vmatmul.mubr.msk.bf16.gmra.mrb[4].mxu1 %vm557_vm3, %v2525_v33 }
 0x1a6   : > { %2315 = vmatmul.mubr.msk.bf16.vlgmr.msra.gmra.mrb[0].mxu0 %vm557_vm3, %v2526_v34  ;;  %1081 = vmatprep.mubr.bf16.mxu1 %v2563_v39 }
 0x1a7   : > { %1841 = vmatprep.mubr.bf16.mxu0 %v2563_v39 }
 0x1ad   : > { %2232 = vmatmul.mubr.msk.bf16.gmra.mrb[8].mxu1 %vm557_vm3, %v2527_v32 }
 0x1ae   : > { %2316 = vmatmul.mubr.msk.bf16.gmra.mrb[4].mxu0 %vm557_vm3, %v2528_v35  ;;  %1091 = vmatprep.mubr.bf16.mxu1 %v2563_v39 }
 0x1af   : > { %1851 = vmatprep.mubr.bf16.mxu0 %v2563_v39 }
 0x1b5   : > { %2233 = vmatmul.mubr.msk.bf16.gmra.mrb[12].mxu1 %vm557_vm3, %v2529_v36 }
 0x1b6   : > { %2317 = vmatmul.mubr.msk.bf16.gmra.mrb[8].mxu0 %vm557_vm3, %v2530_v37  ;;  %1219 = vmatprep.mubr.bf16.mxu1 %v2563_v39 }
 0x1b7   : > { %1861 = vmatprep.mubr.bf16.mxu0 %v2563_v39 }
 0x1bd   : > { %2249 = vmatmul.mubr.msk.bf16.vlgmr.msra.gmra.mrb[8].mxu1 %vm557_vm3, %v2531_v38 }
 0x1be   : > { %2318 = vmatmul.mubr.msk.bf16.gmra.mrb[12].mxu0 %vm557_vm3, %v2532_v40  ;;  %1229 = vmatprep.mubr.bf16.mxu1 %v2563_v39  ;;  %v2567_v39 = vmov 0.0  }
 0x1bf   : > { %407 = vst.msk [vmem:[%s2971_s26] sm:$0xff] %vm406_vm2, %v2567_v39  ;;  %408 = vst.msk [vmem:[%s2971_s26 + $0x8] sm:$0xff] %vm406_vm2, %v2567_v39 }
 0x1c0   : > { %409 = vst.msk [vmem:[%s2971_s26 + $0x10] sm:$0xff] %vm406_vm2, %v2567_v39  ;;  %410 = vst.msk [vmem:[%s2971_s26 + $0x18] sm:$0xff] %vm406_vm2, %v2567_v39 }
 0x1c1   : > { %411 = vst.msk [vmem:[%s2971_s26 + $0x20] sm:$0xff] %vm406_vm2, %v2567_v39  ;;  %412 = vst.msk [vmem:[%s2971_s26 + $0x28] sm:$0xff] %vm406_vm2, %v2567_v39 }
 0x1c2   : > { %413 = vst.msk [vmem:[%s2971_s26 + $0x30] sm:$0xff] %vm406_vm2, %v2567_v39  ;;  %414 = vst.msk [vmem:[%s2971_s26 + $0x38] sm:$0xff] %vm406_vm2, %v2567_v39 }
 0x1c3   : > { %415 = vst.msk [vmem:[%s2976_s7] sm:$0xff] %vm406_vm2, %v2567_v39  ;;  %416 = vst.msk [vmem:[%s2976_s7 + $0x8] sm:$0xff] %vm406_vm2, %v2567_v39 }
 0x1c4   : > { %417 = vst.msk [vmem:[%s2976_s7 + $0x10] sm:$0xff] %vm406_vm2, %v2567_v39  ;;  %418 = vst.msk [vmem:[%s2976_s7 + $0x18] sm:$0xff] %vm406_vm2, %v2567_v39 }
 0x1c5   : > { %2250 = vmatmul.mubr.msk.bf16.gmra.mrb[12].mxu1 %vm557_vm3, %v2533_v41  ;;  %419 = vst.msk [vmem:[%s2976_s7 + $0x20] sm:$0xff] %vm406_vm2, %v2567_v39  ;;  %420 = vst.msk [vmem:[%s2976_s7 + $0x28] sm:$0xff] %vm406_vm2, %v2567_v39 }
 0x1c6   : > { %421 = vst.msk [vmem:[%s2976_s7 + $0x30] sm:$0xff] %vm406_vm2, %v2567_v39  ;;  %422 = vst.msk [vmem:[%s2976_s7 + $0x38] sm:$0xff] %vm406_vm2, %v2567_v39 }
 0x270   : > { %v1063_v23 = vpop.f32.mrb[0].mxu1 }
 0x271   : > { %v1065_v43 = vpop.f32.mrb[1].mxu1 }
 0x272   : > { %v1067_v44 = vpop.f32.mrb[2].mxu1 }
 0x273   : > { %v1069_v45 = vpop.f32.mrb[3].mxu1 }
 0x278   : > { %v1073_v46 = vpop.f32.mrb[4].mxu1 }
 0x279   : > { %v1075_v47 = vpop.f32.mrb[5].mxu1  ;;  %v1833_v48 = vpop.f32.mrb[0].mxu0 }
 0x27a   : > { %v2329_v49 = vadd.f32 %v1833_v48, %v1063_v23  ;;  %v1077_v50 = vpop.f32.mrb[6].mxu1  ;;  %v1835_v25 = vpop.f32.mrb[1].mxu0 }
 0x27b   : > { %v2330_v51 = vadd.f32 %v1835_v25, %v1065_v43  ;;  %v1079_v52 = vpop.f32.mrb[7].mxu1  ;;  %v1837_v53 = vpop.f32.mrb[2].mxu0 }
 0x27c   : > { %v1945_v54 = vmul.f32 %v2329_v49, %v2329_v49  ;;  %v2331_v42 = vadd.f32 %v1837_v53, %v1067_v44  ;;  %v1839_v26 = vpop.f32.mrb[3].mxu0 }
 0x27d   : > { %v1946_v55 = vmul.f32 %v2330_v51, %v2330_v51  ;;  %v2332_v56 = vadd.f32 %v1839_v26, %v1069_v45  ;;  %v1896_v57 = vadd.f32 %v2330_v51, %v2329_v49 }
 0x27e   : > { %v1947_v58 = vmul.f32 %v2331_v42, %v2331_v42 }
 0x27f   : > { %v1948_v59 = vmul.f32 %v2332_v56, %v2332_v56  ;;  %1897 = vadd.xlane.f32.xlu0 %v1896_v57  ;;  %v1899_v60 = vadd.f32 %v2332_v56, %v2331_v42  ;;  %v1961_v61 = vadd.f32 %v1946_v55, %v1945_v54  ;;  %v1888_v55 = vld [vmem:[%s2971_s26] sm:$0xff]  ;;  %v1889_v57 = vld [vmem:[%s2971_s26 + $0x8] sm:$0xff] }
 0x281   : > { %1900 = vadd.xlane.f32.xlu1 %v1899_v60  ;;  %v1843_v62 = vpop.f32.mrb[4].mxu0  ;;  %v1964_v63 = vadd.f32 %v1948_v59, %v1947_v58  ;;  %v1938_v60 = vld [vmem:[%s2976_s7 + $0x8] sm:$0xff] }
 0x282   : > { %v2333_v0 = vadd.f32 %v1843_v62, %v1073_v46  ;;  %v1845_v1 = vpop.f32.mrb[5].mxu0 }
 0x283   : > { %v2334_v2 = vadd.f32 %v1845_v1, %v1075_v47  ;;  %1965 = vadd.xlane.f32.xlu0 %v1964_v63  ;;  %v1847_v3 = vpop.f32.mrb[6].mxu0  ;;  %v1937_v63 = vld [vmem:[%s2976_s7] sm:$0xff] }
 0x284   : > { %v1949_v4 = vmul.f32 %v2333_v0, %v2333_v0  ;;  %v2335_v5 = vadd.f32 %v1847_v3, %v1077_v50  ;;  %v1849_v6 = vpop.f32.mrb[7].mxu0 }
 0x285   : > { %v1950_v7 = vmul.f32 %v2334_v2, %v2334_v2  ;;  %v2336_v8 = vadd.f32 %v1849_v6, %v1079_v52  ;;  %1962 = vadd.xlane.f32.xlu1 %v1961_v61  ;;  %v1902_v9 = vadd.f32 %v2334_v2, %v2333_v0  ;;  %v1890_v2 = vld [vmem:[%s2971_s26 + $0x10] sm:$0xff] }
 0x286   : > { %v1951_v10 = vmul.f32 %v2335_v5, %v2335_v5 }
 0x287   : > { %v1952_v11 = vmul.f32 %v2336_v8, %v2336_v8  ;;  %1903 = vadd.xlane.f32.xlu0 %v1902_v9  ;;  %v1967_v12 = vadd.f32 %v1950_v7, %v1949_v4  ;;  %v1905_v13 = vadd.f32 %v2336_v8, %v2335_v5  ;;  %v1939_v5 = vld [vmem:[%s2976_s7 + $0x10] sm:$0xff]  ;;  %v1891_v8 = vld [vmem:[%s2971_s26 + $0x18] sm:$0xff] }
 0x289   : > { %1968 = vadd.xlane.f32.xlu1 %v1967_v12  ;;  %v1853_v14 = vpop.f32.mrb[8].mxu0  ;;  %v1970_v15 = vadd.f32 %v1952_v11, %v1951_v10  ;;  %v1940_v12 = vld [vmem:[%s2976_s7 + $0x18] sm:$0xff] }
 0x28a   : > { %v1855_v16 = vpop.f32.mrb[9].mxu0 }
 0x28b   : > { %1906 = vadd.xlane.f32.xlu0 %v1905_v13  ;;  %v1857_v17 = vpop.f32.mrb[10].mxu0 }
 0x28c   : > { %v1859_v18 = vpop.f32.mrb[11].mxu0 }
 0x28f   : > { %1971 = vadd.xlane.f32.xlu0 %v1970_v15  ;;  %v1892_v15 = vld [vmem:[%s2971_s26 + $0x20] sm:$0xff] }
 0x290   : > { %v1221_v19 = vpop.f32.mrb[8].mxu1 }
 0x291   : > { %v2337_v20 = vadd.f32 %v1853_v14, %v1221_v19  ;;  %v1223_v21 = vpop.f32.mrb[9].mxu1  ;;  %v1863_v22 = vpop.f32.mrb[12].mxu0 }
 0x292   : > { %v2338_v24 = vadd.f32 %v1855_v16, %v1223_v21  ;;  %v1225_v27 = vpop.f32.mrb[10].mxu1  ;;  %v1865_v28 = vpop.f32.mrb[13].mxu0 }
 0x293   : > { %v1953_v29 = vmul.f32 %v2337_v20, %v2337_v20  ;;  %v2339_v30 = vadd.f32 %v1857_v17, %v1225_v27  ;;  %v1227_v31 = vpop.f32.mrb[11].mxu1  ;;  %v1867_v33 = vpop.f32.mrb[14].mxu0  ;;  %v1893_v17 = vld [vmem:[%s2971_s26 + $0x28] sm:$0xff] }
 0x294   : > { %v1954_v34 = vmul.f32 %v2338_v24, %v2338_v24  ;;  %v2340_v32 = vadd.f32 %v1859_v18, %v1227_v31  ;;  %v1869_v35 = vpop.f32.mrb[15].mxu0  ;;  %v1908_v36 = vadd.f32 %v2338_v24, %v2337_v20  ;;  %v1941_v20 = vld [vmem:[%s2976_s7 + $0x20] sm:$0xff]  ;;  %v1942_v24 = vld [vmem:[%s2976_s7 + $0x28] sm:$0xff] }
 0x295   : > { %v1955_v37 = vmul.f32 %v2339_v30, %v2339_v30 }
 0x296   : > { %v1956_v38 = vmul.f32 %v2340_v32, %v2340_v32  ;;  %1909 = vadd.xlane.f32.xlu1 %v1908_v36  ;;  %v1911_v40 = vadd.f32 %v2340_v32, %v2339_v30  ;;  %v1973_v41 = vadd.f32 %v1954_v34, %v1953_v29  ;;  %v1894_v29 = vld [vmem:[%s2971_s26 + $0x30] sm:$0xff] }
 0x298   : > { %v1231_v39 = vpop.f32.mrb[12].mxu1  ;;  %1912 = vadd.xlane.f32.xlu0 %v1911_v40  ;;  %v1976_v23 = vadd.f32 %v1956_v38, %v1955_v37  ;;  %v1944_v38 = vld [vmem:[%s2976_s7 + $0x38] sm:$0xff] }
 0x299   : > { %v2341_v43 = vadd.f32 %v1863_v22, %v1231_v39  ;;  %v1233_v44 = vpop.f32.mrb[13].mxu1 }
 0x29a   : > { %v2342_v45 = vadd.f32 %v1865_v28, %v1233_v44  ;;  %v1235_v46 = vpop.f32.mrb[14].mxu1  ;;  %1974 = vadd.xlane.f32.xlu1 %v1973_v41 }
 0x29b   : > { %v1957_v47 = vmul.f32 %v2341_v43, %v2341_v43  ;;  %v2343_v48 = vadd.f32 %v1867_v33, %v1235_v46  ;;  %v1237_v49 = vpop.f32.mrb[15].mxu1  ;;  %v1895_v33 = vld [vmem:[%s2971_s26 + $0x38] sm:$0xff] }
 0x29c   : > { %v1958_v50 = vmul.f32 %v2342_v45, %v2342_v45  ;;  %v2344_v25 = vadd.f32 %v1869_v35, %v1237_v49  ;;  %1977 = vadd.xlane.f32.xlu0 %v1976_v23  ;;  %v1914_v51 = vadd.f32 %v2342_v45, %v2341_v43  ;;  %v1943_v35 = vld [vmem:[%s2976_s7 + $0x30] sm:$0xff] }
 0x29d   : > { %v1959_v52 = vmul.f32 %v2343_v48, %v2343_v48 }
 0x29e   : > { %v1960_v53 = vmul.f32 %v2344_v25, %v2344_v25  ;;  %1915 = vadd.xlane.f32.xlu1 %v1914_v51  ;;  %v1917_v54 = vadd.f32 %v2344_v25, %v2343_v48  ;;  %v1979_v42 = vadd.f32 %v1958_v50, %v1957_v47 }
 0x2a0   : > { %1918 = vadd.xlane.f32.xlu0 %v1917_v54  ;;  %v1982_v26 = vadd.f32 %v1960_v53, %v1959_v52 }
 0x2a2   : > { %1980 = vadd.xlane.f32.xlu1 %v1979_v42 }
 0x2a4   : > { %1983 = vadd.xlane.f32.xlu0 %v1982_v26 }
 0x30c   : > { %v1898_v56 = vpop.xlane.xlu0 %1897 }
 0x30d   : > { %v1920_v58 = vadd.f32 %v1898_v56, %v1888_v55 }
 0x30e   : > { %v1901_v59 = vpop.xlane.xlu1 %1900 }
 0x30f   : > { %1929 = vst.msk [vmem:[%s2971_s26] sm:$0xff] %vm406_vm2, %v1920_v58  ;;  %v1921_v61 = vadd.f32 %v1901_v59, %v1889_v57 }
 0x310   : > { %v1966_v62 = vpop.xlane.xlu0 %1965 }
 0x311   : > { %1930 = vst.msk [vmem:[%s2971_s26 + $0x8] sm:$0xff] %vm406_vm2, %v1921_v61  ;;  %v1986_v0 = vadd.f32 %v1966_v62, %v1938_v60 }
 0x312   : > { %v1963_v1 = vpop.xlane.xlu1 %1962 }
 0x313   : > { %1994 = vst.msk [vmem:[%s2976_s7 + $0x8] sm:$0xff] %vm406_vm2, %v1986_v0  ;;  %v1985_v3 = vadd.f32 %v1963_v1, %v1937_v63 }
 0x314   : > { %v1904_v4 = vpop.xlane.xlu0 %1903 }
 0x315   : > { %1993 = vst.msk [vmem:[%s2976_s7] sm:$0xff] %vm406_vm2, %v1985_v3  ;;  %v1922_v6 = vadd.f32 %v1904_v4, %v1890_v2 }
 0x316   : > { %v1969_v7 = vpop.xlane.xlu1 %1968 }
 0x317   : > { %1931 = vst.msk [vmem:[%s2971_s26 + $0x10] sm:$0xff] %vm406_vm2, %v1922_v6  ;;  %v1987_v9 = vadd.f32 %v1969_v7, %v1939_v5 }
 0x318   : > { %v1907_v10 = vpop.xlane.xlu0 %1906 }
 0x319   : > { %1995 = vst.msk [vmem:[%s2976_s7 + $0x10] sm:$0xff] %vm406_vm2, %v1987_v9  ;;  %v1923_v11 = vadd.f32 %v1907_v10, %v1891_v8 }
 0x31b   : > { %1932 = vst.msk [vmem:[%s2971_s26 + $0x18] sm:$0xff] %vm406_vm2, %v1923_v11 }
 0x31c   : > { %v1972_v13 = vpop.xlane.xlu0 %1971 }
 0x31d   : > { %v1988_v14 = vadd.f32 %v1972_v13, %v1940_v12 }
 0x31f   : > { %1996 = vst.msk [vmem:[%s2976_s7 + $0x18] sm:$0xff] %vm406_vm2, %v1988_v14 }
 0x323   : > { %v1910_v16 = vpop.xlane.xlu1 %1909 }
 0x324   : > { %v1924_v18 = vadd.f32 %v1910_v16, %v1892_v15 }
 0x325   : > { %v1913_v19 = vpop.xlane.xlu0 %1912 }
 0x326   : > { %1933 = vst.msk [vmem:[%s2971_s26 + $0x20] sm:$0xff] %vm406_vm2, %v1924_v18  ;;  %v1925_v21 = vadd.f32 %v1913_v19, %v1893_v17 }
 0x327   : > { %v1975_v22 = vpop.xlane.xlu1 %1974 }
 0x328   : > { %1934 = vst.msk [vmem:[%s2971_s26 + $0x28] sm:$0xff] %vm406_vm2, %v1925_v21  ;;  %v1989_v27 = vadd.f32 %v1975_v22, %v1941_v20 }
 0x329   : > { %v1978_v28 = vpop.xlane.xlu0 %1977 }
 0x32a   : > { %1997 = vst.msk [vmem:[%s2976_s7 + $0x20] sm:$0xff] %vm406_vm2, %v1989_v27  ;;  %v1990_v30 = vadd.f32 %v1978_v28, %v1942_v24 }
 0x32b   : > { %v1916_v31 = vpop.xlane.xlu1 %1915 }
 0x32c   : > { %1998 = vst.msk [vmem:[%s2976_s7 + $0x28] sm:$0xff] %vm406_vm2, %v1990_v30  ;;  %v1926_v34 = vadd.f32 %v1916_v31, %v1894_v29 }
 0x32d   : > { %v1919_v32 = vpop.xlane.xlu0 %1918 }
 0x32e   : > { %1935 = vst.msk [vmem:[%s2971_s26 + $0x30] sm:$0xff] %vm406_vm2, %v1926_v34  ;;  %v1927_v36 = vadd.f32 %v1919_v32, %v1895_v33 }
 0x32f   : > { %v1981_v37 = vpop.xlane.xlu1 %1980 }
 0x330   : > { %1936 = vst.msk [vmem:[%s2971_s26 + $0x38] sm:$0xff] %vm406_vm2, %v1927_v36  ;;  %v1991_v40 = vadd.f32 %v1981_v37, %v1943_v35 }
 0x331   : > { %v1984_v41 = vpop.xlane.xlu0 %1983 }
 0x332   : > { %1999 = vst.msk [vmem:[%s2976_s7 + $0x30] sm:$0xff] %vm406_vm2, %v1991_v40  ;;  %v1992_v39 = vadd.f32 %v1984_v41, %v1944_v38 }
 0x334   : > { %2000 = vst.msk [vmem:[%s2976_s7 + $0x38] sm:$0xff] %vm406_vm2, %v1992_v39 }
 0x335 PF: > { %s17_s23 = sadd.s32 1, %s2556_s23   ;;  %s3074_s21 = smov %s2552_s22 }
 0x336   : > { %p14_p5 = scmp.ge.s32.totalorder %s17_s23, 4   ;;  %s3075_s22 = smov %s3077_s24 }
 0x338   :  { %16 = sbr.rel (!%p14_p5) target bundleno = 2 (0x2), region = 103 }

</bundles_post_ra>
